<compile_context>
chip_gen: v7x
topology: tpu7x:2x2x1
jax: 0.10.0
libtpu: 0.0.40
codegen_flags: <defaults>
</compile_context>

<pallas_src>
from functools import partial

import jax
import jax.numpy as jnp
from jax.experimental import pallas as pl
from jax.experimental.pallas import tpu as pltpu


def resblock_kernel(row_ref, col_ref, x_ref, w1_ref, b1_ref, w2_ref, b2_ref,
                    out_ref, patch_scr, *, H, W, K):
    """One grid step processes NB images, batch folded into the lane axis.

    row_ref/col_ref : (Cin, L) int32   per-lane h / w index (L = NB*H*W)
    x_ref           : (Cin, L)         lane-folded input block
    w1_ref          : (Cout, K*K*Cin)  conv1 weight, im2col layout
    b1_ref          : (Cout, 1)
    w2_ref          : (Cout, K*K*Cout) conv2 weight, im2col layout
    b2_ref          : (Cout, 1)
    out_ref         : (Cout, L)        lane-folded output block
    patch_scr       : VMEM (K*K*C, L)  im2col patch buffer (reused by both convs)
    """
    P = K // 2
    _, L = x_ref.shape

    row = row_ref[...]          # (Cin, L) int32, h of each lane
    col = col_ref[...]          # (Cin, L) int32, w of each lane

    def build_patches(act):
        # act: (C, L) f32 held in vregs.  Writes the K*K taps into patch_scr.
        C = act.shape[0]
        for dh in range(K):
            for dw in range(K):
                oh, ow = dh - P, dw - P
                s = oh * W + ow
                shifted = act if s == 0 else pltpu.roll(act, (-s) % L, 1)
                hh = row + oh
                ww = col + ow
                valid = (hh >= 0) & (hh < H) & (ww >= 0) & (ww < W)
                t = dh * K + dw
                patch_scr[t * C:(t + 1) * C, :] = jnp.where(
                    valid, shifted, 0.0).astype(patch_scr.dtype)

    x_act = x_ref[...].astype(jnp.float32)                            # (Cin, L)

    # ---- conv1: fused zero-pad (masks) -> roll-im2col -> single MXU matmul -> bias -> ReLU ----
    build_patches(x_act)
    acc1 = jnp.dot(w1_ref[...], patch_scr[...],
                   preferred_element_type=jnp.float32) + b1_ref[...]  # (Cout, L)
    mid = jnp.maximum(acc1, 0.0)

    # ---- conv2 ----
    build_patches(mid)
    acc2 = jnp.dot(w2_ref[...], patch_scr[...],
                   preferred_element_type=jnp.float32) + b2_ref[...]  # (Cout, L)

    # ---- residual (requires Cin == Cout): centre tap == x itself ----
    out_ref[...] = (acc2 + x_act).astype(out_ref.dtype)


def _pick_nb(n, nb_max):
    nb = 1
    for cand in range(1, min(n, nb_max) + 1):
        if n % cand == 0:
            nb = cand
    return nb


def resblock_forward(x, w1, b1, w2, b2, kernel_size=3, nb_max=8, use_bf16_mxu=False):
    """x: (N, Cin, H, W) NCHW; w*: (Cout, Cin, K, K) PyTorch OIHW; b*: (Cout,)."""
    N, Cin, H, W = x.shape
    Cout = w1.shape[0]
    K = kernel_size
    HW = H * W
    assert Cin == Cout, "ResBlock residual add requires in_feat == out_feat"

    NB = _pick_nb(N, nb_max)     # images per grid step
    G = N // NB                  # grid length
    L = NB * HW                  # lane width per step

    mm_dtype = jnp.bfloat16 if use_bf16_mxu else jnp.float32

    # im2col weight layout: w_mat[co, (dh*K+dw)*C + ci] = w[co, ci, dh, dw]
    w1_mat = jnp.transpose(w1, (0, 2, 3, 1)).reshape(Cout, K * K * Cin).astype(mm_dtype)
    w2_mat = jnp.transpose(w2, (0, 2, 3, 1)).reshape(Cout, K * K * Cout).astype(mm_dtype)
    b1_c = b1.reshape(Cout, 1).astype(jnp.float32)
    b2_c = b2.reshape(Cout, 1).astype(jnp.float32)

    # Fold the batch into the lane axis: x_l[ci, b*HW + h*W + w] = x[b, ci, h, w]
    x_l = jnp.transpose(x, (1, 0, 2, 3)).reshape(Cin, N * HW)

    # Per-lane (h, w) decode for the boundary masks (same block every step -> fetched once).
    sp = jnp.arange(L, dtype=jnp.int32)
    row_ids = jnp.broadcast_to(((sp // W) % H)[None, :], (Cin, L))
    col_ids = jnp.broadcast_to((sp % W)[None, :], (Cin, L))

    out_l = pl.pallas_call(
        partial(resblock_kernel, H=H, W=W, K=K),
        out_shape=jax.ShapeDtypeStruct((Cout, N * HW), x.dtype),
        grid=(G,),
        in_specs=[
            pl.BlockSpec((Cin, L), lambda n: (0, 0)),              # row_ids (constant block)
            pl.BlockSpec((Cin, L), lambda n: (0, 0)),              # col_ids (constant block)
            pl.BlockSpec((Cin, L), lambda n: (0, n)),              # lane-folded input
            pl.BlockSpec((Cout, K * K * Cin), lambda n: (0, 0)),   # w1
            pl.BlockSpec((Cout, 1), lambda n: (0, 0)),             # b1
            pl.BlockSpec((Cout, K * K * Cout), lambda n: (0, 0)),  # w2
            pl.BlockSpec((Cout, 1), lambda n: (0, 0)),             # b2
        ],
        out_specs=pl.BlockSpec((Cout, L), lambda n: (0, n)),
        scratch_shapes=[pltpu.VMEM((K * K * Cin, L), mm_dtype)],
        compiler_params=pltpu.CompilerParams(
            dimension_semantics=("parallel",)),
    )(row_ids, col_ids, x_l, w1_mat, b1_c, w2_mat, b2_c)

    # Layout plumbing only: lane-folded (Cout, N*HW) -> NCHW.
    return jnp.transpose(out_l.reshape(Cout, N, H, W), (1, 0, 2, 3))


def resblock_reference(x, w1, b1, w2, b2):
    """Pure-JAX reference matching the PyTorch module exactly (NCHW)."""
    def conv(inp, w, b):
        y = jax.lax.conv_general_dilated(
            inp, w, window_strides=(1, 1), padding=[(1, 1), (1, 1)],
            dimension_numbers=("NCHW", "OIHW", "NCHW"))
        return y + b.reshape(1, -1, 1, 1)
    h = jax.nn.relu(conv(x, w1, b1))
    return conv(h, w2, b2) + x


if __name__ == "__main__":
    key = jax.random.PRNGKey(0)
    k_x, k_w1, k_b1, k_w2, k_b2 = jax.random.split(key, 5)

    N, C, H, W = 2, 4, 16, 16          # in_feat = out_feat = 4 (residual requires it)
    K = 3

    x = jax.random.normal(k_x, (N, C, H, W), dtype=jnp.float32)
    w1 = jax.random.normal(k_w1, (C, C, K, K), dtype=jnp.float32) * 0.1
    b1 = jax.random.normal(k_b1, (C,), dtype=jnp.float32) * 0.1
    w2 = jax.random.normal(k_w2, (C, C, K, K), dtype=jnp.float32) * 0.1
    b2 = jax.random.normal(k_b2, (C,), dtype=jnp.float32) * 0.1

    out = jax.block_until_ready(resblock_forward(x, w1, b1, w2, b2, kernel_size=K))
    ref = jax.block_until_ready(resblock_reference(x, w1, b1, w2, b2))

    assert out.shape == (N, C, H, W)
    assert jnp.allclose(out, ref, atol=1e-4, rtol=1e-4), "mismatch vs reference"
    print("KERNEL_OK")
</pallas_src>

<mosaic_0001>
module attributes {stable_mosaic.version = 11 : i64} {
  func.func @resblock_kernel(%arg0: i32, %arg1: memref<4x512xi32, #tpu.memory_space<vmem>>, %arg2: memref<4x512xi32, #tpu.memory_space<vmem>>, %arg3: memref<4x512xf32, #tpu.memory_space<vmem>>, %arg4: memref<4x36xf32, #tpu.memory_space<vmem>>, %arg5: memref<4x1xf32, #tpu.memory_space<vmem>>, %arg6: memref<4x36xf32, #tpu.memory_space<vmem>>, %arg7: memref<4x1xf32, #tpu.memory_space<vmem>>, %arg8: memref<4x512xf32, #tpu.memory_space<vmem>>, %arg9: memref<36x512xf32, #tpu.memory_space<vmem>>) attributes {dimension_semantics = [#tpu.dimension_semantics<parallel>], iteration_bounds = array<i64: 1>, scalar_prefetch = 0 : i64, scratch_operands = 1 : i64, tpu.core_type = #tpu.core_type<tc>, window_params = [{pipeline_mode = #tpu.pipeline_mode<synchronous>, transform_indices = @transform_0, window_bounds = array<i64: 4, 512>}, {pipeline_mode = #tpu.pipeline_mode<synchronous>, transform_indices = @transform_1, window_bounds = array<i64: 4, 512>}, {transform_indices = @transform_2, window_bounds = array<i64: 4, 512>}, {pipeline_mode = #tpu.pipeline_mode<synchronous>, transform_indices = @transform_3, window_bounds = array<i64: 4, 36>}, {pipeline_mode = #tpu.pipeline_mode<synchronous>, transform_indices = @transform_4, window_bounds = array<i64: 4, 1>}, {pipeline_mode = #tpu.pipeline_mode<synchronous>, transform_indices = @transform_5, window_bounds = array<i64: 4, 36>}, {pipeline_mode = #tpu.pipeline_mode<synchronous>, transform_indices = @transform_6, window_bounds = array<i64: 4, 1>}, {transform_indices = @transform_7, window_bounds = array<i64: 4, 512>}]} {
    %c0 = arith.constant 0 : index
    %c0_0 = arith.constant 0 : index
    %0 = vector.load %arg1[%c0, %c0_0] : memref<4x512xi32, #tpu.memory_space<vmem>>, vector<4x512xi32>
    %c0_1 = arith.constant 0 : index
    %c0_2 = arith.constant 0 : index
    %1 = vector.load %arg2[%c0_1, %c0_2] : memref<4x512xi32, #tpu.memory_space<vmem>>, vector<4x512xi32>
    %c0_3 = arith.constant 0 : index
    %c0_4 = arith.constant 0 : index
    %2 = vector.load %arg3[%c0_3, %c0_4] : memref<4x512xf32, #tpu.memory_space<vmem>>, vector<4x512xf32>
    %c17_i32 = arith.constant 17 : i32
    %3 = tpu.dynamic_rotate %2 by %c17_i32 dim 1 : vector<4x512xf32>, i32 -> vector<4x512xf32>
    %c-1_i32 = arith.constant -1 : i32
    %4 = vector.broadcast %c-1_i32 : i32 to vector<4x512xi32>
    %5 = arith.addi %0, %4 : vector<4x512xi32>
    %c-1_i32_5 = arith.constant -1 : i32
    %6 = vector.broadcast %c-1_i32_5 : i32 to vector<4x512xi32>
    %7 = arith.addi %1, %6 : vector<4x512xi32>
    %c0_i32 = arith.constant 0 : i32
    %8 = vector.broadcast %c0_i32 : i32 to vector<4x512xi32>
    %9 = arith.cmpi sge, %5, %8 : vector<4x512xi32>
    %c16_i32 = arith.constant 16 : i32
    %10 = vector.broadcast %c16_i32 : i32 to vector<4x512xi32>
    %11 = arith.cmpi slt, %5, %10 : vector<4x512xi32>
    %12 = arith.andi %9, %11 : vector<4x512xi1>
    %c0_i32_6 = arith.constant 0 : i32
    %13 = vector.broadcast %c0_i32_6 : i32 to vector<4x512xi32>
    %14 = arith.cmpi sge, %7, %13 : vector<4x512xi32>
    %15 = arith.andi %12, %14 : vector<4x512xi1>
    %c16_i32_7 = arith.constant 16 : i32
    %16 = vector.broadcast %c16_i32_7 : i32 to vector<4x512xi32>
    %17 = arith.cmpi slt, %7, %16 : vector<4x512xi32>
    %18 = arith.andi %15, %17 : vector<4x512xi1>
    %cst = arith.constant 0.000000e+00 : f32
    %19 = vector.broadcast %cst : f32 to vector<4x512xf32>
    %20 = arith.select %18, %3, %19 : vector<4x512xi1>, vector<4x512xf32>
    %c0_8 = arith.constant 0 : index
    %c0_9 = arith.constant 0 : index
    %21 = vector.load %arg9[%c0_8, %c0_9] : memref<36x512xf32, #tpu.memory_space<vmem>>, vector<4x512xf32>
    tpu.vector_store %arg9[%c0_8, %c0_9], %20 {strides = array<i32>} : memref<36x512xf32, #tpu.memory_space<vmem>>, vector<4x512xf32>,
    %c16_i32_10 = arith.constant 16 : i32
    %22 = tpu.dynamic_rotate %2 by %c16_i32_10 dim 1 : vector<4x512xf32>, i32 -> vector<4x512xf32>
    %c-1_i32_11 = arith.constant -1 : i32
    %23 = vector.broadcast %c-1_i32_11 : i32 to vector<4x512xi32>
    %24 = arith.addi %0, %23 : vector<4x512xi32>
    %c0_i32_12 = arith.constant 0 : i32
    %25 = vector.broadcast %c0_i32_12 : i32 to vector<4x512xi32>
    %26 = arith.addi %1, %25 : vector<4x512xi32>
    %c0_i32_13 = arith.constant 0 : i32
    %27 = vector.broadcast %c0_i32_13 : i32 to vector<4x512xi32>
    %28 = arith.cmpi sge, %24, %27 : vector<4x512xi32>
    %c16_i32_14 = arith.constant 16 : i32
    %29 = vector.broadcast %c16_i32_14 : i32 to vector<4x512xi32>
    %30 = arith.cmpi slt, %24, %29 : vector<4x512xi32>
    %31 = arith.andi %28, %30 : vector<4x512xi1>
    %c0_i32_15 = arith.constant 0 : i32
    %32 = vector.broadcast %c0_i32_15 : i32 to vector<4x512xi32>
    %33 = arith.cmpi sge, %26, %32 : vector<4x512xi32>
    %34 = arith.andi %31, %33 : vector<4x512xi1>
    %c16_i32_16 = arith.constant 16 : i32
    %35 = vector.broadcast %c16_i32_16 : i32 to vector<4x512xi32>
    %36 = arith.cmpi slt, %26, %35 : vector<4x512xi32>
    %37 = arith.andi %34, %36 : vector<4x512xi1>
    %cst_17 = arith.constant 0.000000e+00 : f32
    %38 = vector.broadcast %cst_17 : f32 to vector<4x512xf32>
    %39 = arith.select %37, %22, %38 : vector<4x512xi1>, vector<4x512xf32>
    %c4 = arith.constant 4 : index
    %c0_18 = arith.constant 0 : index
    %40 = vector.load %arg9[%c4, %c0_18] : memref<36x512xf32, #tpu.memory_space<vmem>>, vector<4x512xf32>
    tpu.vector_store %arg9[%c4, %c0_18], %39 {strides = array<i32>} : memref<36x512xf32, #tpu.memory_space<vmem>>, vector<4x512xf32>,
    %c15_i32 = arith.constant 15 : i32
    %41 = tpu.dynamic_rotate %2 by %c15_i32 dim 1 : vector<4x512xf32>, i32 -> vector<4x512xf32>
    %c-1_i32_19 = arith.constant -1 : i32
    %42 = vector.broadcast %c-1_i32_19 : i32 to vector<4x512xi32>
    %43 = arith.addi %0, %42 : vector<4x512xi32>
    %c1_i32 = arith.constant 1 : i32
    %44 = vector.broadcast %c1_i32 : i32 to vector<4x512xi32>
    %45 = arith.addi %1, %44 : vector<4x512xi32>
    %c0_i32_20 = arith.constant 0 : i32
    %46 = vector.broadcast %c0_i32_20 : i32 to vector<4x512xi32>
    %47 = arith.cmpi sge, %43, %46 : vector<4x512xi32>
    %c16_i32_21 = arith.constant 16 : i32
    %48 = vector.broadcast %c16_i32_21 : i32 to vector<4x512xi32>
    %49 = arith.cmpi slt, %43, %48 : vector<4x512xi32>
    %50 = arith.andi %47, %49 : vector<4x512xi1>
    %c0_i32_22 = arith.constant 0 : i32
    %51 = vector.broadcast %c0_i32_22 : i32 to vector<4x512xi32>
    %52 = arith.cmpi sge, %45, %51 : vector<4x512xi32>
    %53 = arith.andi %50, %52 : vector<4x512xi1>
    %c16_i32_23 = arith.constant 16 : i32
    %54 = vector.broadcast %c16_i32_23 : i32 to vector<4x512xi32>
    %55 = arith.cmpi slt, %45, %54 : vector<4x512xi32>
    %56 = arith.andi %53, %55 : vector<4x512xi1>
    %cst_24 = arith.constant 0.000000e+00 : f32
    %57 = vector.broadcast %cst_24 : f32 to vector<4x512xf32>
    %58 = arith.select %56, %41, %57 : vector<4x512xi1>, vector<4x512xf32>
    %c8 = arith.constant 8 : index
    %c0_25 = arith.constant 0 : index
    %59 = vector.load %arg9[%c8, %c0_25] : memref<36x512xf32, #tpu.memory_space<vmem>>, vector<4x512xf32>
    tpu.vector_store %arg9[%c8, %c0_25], %58 {strides = array<i32>} : memref<36x512xf32, #tpu.memory_space<vmem>>, vector<4x512xf32>,
    %c1_i32_26 = arith.constant 1 : i32
    %60 = tpu.dynamic_rotate %2 by %c1_i32_26 dim 1 : vector<4x512xf32>, i32 -> vector<4x512xf32>
    %c0_i32_27 = arith.constant 0 : i32
    %61 = vector.broadcast %c0_i32_27 : i32 to vector<4x512xi32>
    %62 = arith.addi %0, %61 : vector<4x512xi32>
    %c-1_i32_28 = arith.constant -1 : i32
    %63 = vector.broadcast %c-1_i32_28 : i32 to vector<4x512xi32>
    %64 = arith.addi %1, %63 : vector<4x512xi32>
    %c0_i32_29 = arith.constant 0 : i32
    %65 = vector.broadcast %c0_i32_29 : i32 to vector<4x512xi32>
    %66 = arith.cmpi sge, %62, %65 : vector<4x512xi32>
    %c16_i32_30 = arith.constant 16 : i32
    %67 = vector.broadcast %c16_i32_30 : i32 to vector<4x512xi32>
    %68 = arith.cmpi slt, %62, %67 : vector<4x512xi32>
    %69 = arith.andi %66, %68 : vector<4x512xi1>
    %c0_i32_31 = arith.constant 0 : i32
    %70 = vector.broadcast %c0_i32_31 : i32 to vector<4x512xi32>
    %71 = arith.cmpi sge, %64, %70 : vector<4x512xi32>
    %72 = arith.andi %69, %71 : vector<4x512xi1>
    %c16_i32_32 = arith.constant 16 : i32
    %73 = vector.broadcast %c16_i32_32 : i32 to vector<4x512xi32>
    %74 = arith.cmpi slt, %64, %73 : vector<4x512xi32>
    %75 = arith.andi %72, %74 : vector<4x512xi1>
    %cst_33 = arith.constant 0.000000e+00 : f32
    %76 = vector.broadcast %cst_33 : f32 to vector<4x512xf32>
    %77 = arith.select %75, %60, %76 : vector<4x512xi1>, vector<4x512xf32>
    %c12 = arith.constant 12 : index
    %c0_34 = arith.constant 0 : index
    %78 = vector.load %arg9[%c12, %c0_34] : memref<36x512xf32, #tpu.memory_space<vmem>>, vector<4x512xf32>
    tpu.vector_store %arg9[%c12, %c0_34], %77 {strides = array<i32>} : memref<36x512xf32, #tpu.memory_space<vmem>>, vector<4x512xf32>,
    %c0_i32_35 = arith.constant 0 : i32
    %79 = vector.broadcast %c0_i32_35 : i32 to vector<4x512xi32>
    %80 = arith.addi %0, %79 : vector<4x512xi32>
    %c0_i32_36 = arith.constant 0 : i32
    %81 = vector.broadcast %c0_i32_36 : i32 to vector<4x512xi32>
    %82 = arith.addi %1, %81 : vector<4x512xi32>
    %c0_i32_37 = arith.constant 0 : i32
    %83 = vector.broadcast %c0_i32_37 : i32 to vector<4x512xi32>
    %84 = arith.cmpi sge, %80, %83 : vector<4x512xi32>
    %c16_i32_38 = arith.constant 16 : i32
    %85 = vector.broadcast %c16_i32_38 : i32 to vector<4x512xi32>
    %86 = arith.cmpi slt, %80, %85 : vector<4x512xi32>
    %87 = arith.andi %84, %86 : vector<4x512xi1>
    %c0_i32_39 = arith.constant 0 : i32
    %88 = vector.broadcast %c0_i32_39 : i32 to vector<4x512xi32>
    %89 = arith.cmpi sge, %82, %88 : vector<4x512xi32>
    %90 = arith.andi %87, %89 : vector<4x512xi1>
    %c16_i32_40 = arith.constant 16 : i32
    %91 = vector.broadcast %c16_i32_40 : i32 to vector<4x512xi32>
    %92 = arith.cmpi slt, %82, %91 : vector<4x512xi32>
    %93 = arith.andi %90, %92 : vector<4x512xi1>
    %cst_41 = arith.constant 0.000000e+00 : f32
    %94 = vector.broadcast %cst_41 : f32 to vector<4x512xf32>
    %95 = arith.select %93, %2, %94 : vector<4x512xi1>, vector<4x512xf32>
    %c16 = arith.constant 16 : index
    %c0_42 = arith.constant 0 : index
    %96 = vector.load %arg9[%c16, %c0_42] : memref<36x512xf32, #tpu.memory_space<vmem>>, vector<4x512xf32>
    tpu.vector_store %arg9[%c16, %c0_42], %95 {strides = array<i32>} : memref<36x512xf32, #tpu.memory_space<vmem>>, vector<4x512xf32>,
    %c511_i32 = arith.constant 511 : i32
    %97 = tpu.dynamic_rotate %2 by %c511_i32 dim 1 : vector<4x512xf32>, i32 -> vector<4x512xf32>
    %c0_i32_43 = arith.constant 0 : i32
    %98 = vector.broadcast %c0_i32_43 : i32 to vector<4x512xi32>
    %99 = arith.addi %0, %98 : vector<4x512xi32>
    %c1_i32_44 = arith.constant 1 : i32
    %100 = vector.broadcast %c1_i32_44 : i32 to vector<4x512xi32>
    %101 = arith.addi %1, %100 : vector<4x512xi32>
    %c0_i32_45 = arith.constant 0 : i32
    %102 = vector.broadcast %c0_i32_45 : i32 to vector<4x512xi32>
    %103 = arith.cmpi sge, %99, %102 : vector<4x512xi32>
    %c16_i32_46 = arith.constant 16 : i32
    %104 = vector.broadcast %c16_i32_46 : i32 to vector<4x512xi32>
    %105 = arith.cmpi slt, %99, %104 : vector<4x512xi32>
    %106 = arith.andi %103, %105 : vector<4x512xi1>
    %c0_i32_47 = arith.constant 0 : i32
    %107 = vector.broadcast %c0_i32_47 : i32 to vector<4x512xi32>
    %108 = arith.cmpi sge, %101, %107 : vector<4x512xi32>
    %109 = arith.andi %106, %108 : vector<4x512xi1>
    %c16_i32_48 = arith.constant 16 : i32
    %110 = vector.broadcast %c16_i32_48 : i32 to vector<4x512xi32>
    %111 = arith.cmpi slt, %101, %110 : vector<4x512xi32>
    %112 = arith.andi %109, %111 : vector<4x512xi1>
    %cst_49 = arith.constant 0.000000e+00 : f32
    %113 = vector.broadcast %cst_49 : f32 to vector<4x512xf32>
    %114 = arith.select %112, %97, %113 : vector<4x512xi1>, vector<4x512xf32>
    %c20 = arith.constant 20 : index
    %c0_50 = arith.constant 0 : index
    %115 = vector.load %arg9[%c20, %c0_50] : memref<36x512xf32, #tpu.memory_space<vmem>>, vector<4x512xf32>
    tpu.vector_store %arg9[%c20, %c0_50], %114 {strides = array<i32>} : memref<36x512xf32, #tpu.memory_space<vmem>>, vector<4x512xf32>,
    %c497_i32 = arith.constant 497 : i32
    %116 = tpu.dynamic_rotate %2 by %c497_i32 dim 1 : vector<4x512xf32>, i32 -> vector<4x512xf32>
    %c1_i32_51 = arith.constant 1 : i32
    %117 = vector.broadcast %c1_i32_51 : i32 to vector<4x512xi32>
    %118 = arith.addi %0, %117 : vector<4x512xi32>
    %c-1_i32_52 = arith.constant -1 : i32
    %119 = vector.broadcast %c-1_i32_52 : i32 to vector<4x512xi32>
    %120 = arith.addi %1, %119 : vector<4x512xi32>
    %c0_i32_53 = arith.constant 0 : i32
    %121 = vector.broadcast %c0_i32_53 : i32 to vector<4x512xi32>
    %122 = arith.cmpi sge, %118, %121 : vector<4x512xi32>
    %c16_i32_54 = arith.constant 16 : i32
    %123 = vector.broadcast %c16_i32_54 : i32 to vector<4x512xi32>
    %124 = arith.cmpi slt, %118, %123 : vector<4x512xi32>
    %125 = arith.andi %122, %124 : vector<4x512xi1>
    %c0_i32_55 = arith.constant 0 : i32
    %126 = vector.broadcast %c0_i32_55 : i32 to vector<4x512xi32>
    %127 = arith.cmpi sge, %120, %126 : vector<4x512xi32>
    %128 = arith.andi %125, %127 : vector<4x512xi1>
    %c16_i32_56 = arith.constant 16 : i32
    %129 = vector.broadcast %c16_i32_56 : i32 to vector<4x512xi32>
    %130 = arith.cmpi slt, %120, %129 : vector<4x512xi32>
    %131 = arith.andi %128, %130 : vector<4x512xi1>
    %cst_57 = arith.constant 0.000000e+00 : f32
    %132 = vector.broadcast %cst_57 : f32 to vector<4x512xf32>
    %133 = arith.select %131, %116, %132 : vector<4x512xi1>, vector<4x512xf32>
    %c24 = arith.constant 24 : index
    %c0_58 = arith.constant 0 : index
    %134 = vector.load %arg9[%c24, %c0_58] : memref<36x512xf32, #tpu.memory_space<vmem>>, vector<4x512xf32>
    tpu.vector_store %arg9[%c24, %c0_58], %133 {strides = array<i32>} : memref<36x512xf32, #tpu.memory_space<vmem>>, vector<4x512xf32>,
    %c496_i32 = arith.constant 496 : i32
    %135 = tpu.dynamic_rotate %2 by %c496_i32 dim 1 : vector<4x512xf32>, i32 -> vector<4x512xf32>
    %c1_i32_59 = arith.constant 1 : i32
    %136 = vector.broadcast %c1_i32_59 : i32 to vector<4x512xi32>
    %137 = arith.addi %0, %136 : vector<4x512xi32>
    %c0_i32_60 = arith.constant 0 : i32
    %138 = vector.broadcast %c0_i32_60 : i32 to vector<4x512xi32>
    %139 = arith.addi %1, %138 : vector<4x512xi32>
    %c0_i32_61 = arith.constant 0 : i32
    %140 = vector.broadcast %c0_i32_61 : i32 to vector<4x512xi32>
    %141 = arith.cmpi sge, %137, %140 : vector<4x512xi32>
    %c16_i32_62 = arith.constant 16 : i32
    %142 = vector.broadcast %c16_i32_62 : i32 to vector<4x512xi32>
    %143 = arith.cmpi slt, %137, %142 : vector<4x512xi32>
    %144 = arith.andi %141, %143 : vector<4x512xi1>
    %c0_i32_63 = arith.constant 0 : i32
    %145 = vector.broadcast %c0_i32_63 : i32 to vector<4x512xi32>
    %146 = arith.cmpi sge, %139, %145 : vector<4x512xi32>
    %147 = arith.andi %144, %146 : vector<4x512xi1>
    %c16_i32_64 = arith.constant 16 : i32
    %148 = vector.broadcast %c16_i32_64 : i32 to vector<4x512xi32>
    %149 = arith.cmpi slt, %139, %148 : vector<4x512xi32>
    %150 = arith.andi %147, %149 : vector<4x512xi1>
    %cst_65 = arith.constant 0.000000e+00 : f32
    %151 = vector.broadcast %cst_65 : f32 to vector<4x512xf32>
    %152 = arith.select %150, %135, %151 : vector<4x512xi1>, vector<4x512xf32>
    %c28 = arith.constant 28 : index
    %c0_66 = arith.constant 0 : index
    %153 = vector.load %arg9[%c28, %c0_66] : memref<36x512xf32, #tpu.memory_space<vmem>>, vector<4x512xf32>
    tpu.vector_store %arg9[%c28, %c0_66], %152 {strides = array<i32>} : memref<36x512xf32, #tpu.memory_space<vmem>>, vector<4x512xf32>,
    %c495_i32 = arith.constant 495 : i32
    %154 = tpu.dynamic_rotate %2 by %c495_i32 dim 1 : vector<4x512xf32>, i32 -> vector<4x512xf32>
    %c1_i32_67 = arith.constant 1 : i32
    %155 = vector.broadcast %c1_i32_67 : i32 to vector<4x512xi32>
    %156 = arith.addi %0, %155 : vector<4x512xi32>
    %c1_i32_68 = arith.constant 1 : i32
    %157 = vector.broadcast %c1_i32_68 : i32 to vector<4x512xi32>
    %158 = arith.addi %1, %157 : vector<4x512xi32>
    %c0_i32_69 = arith.constant 0 : i32
    %159 = vector.broadcast %c0_i32_69 : i32 to vector<4x512xi32>
    %160 = arith.cmpi sge, %156, %159 : vector<4x512xi32>
    %c16_i32_70 = arith.constant 16 : i32
    %161 = vector.broadcast %c16_i32_70 : i32 to vector<4x512xi32>
    %162 = arith.cmpi slt, %156, %161 : vector<4x512xi32>
    %163 = arith.andi %160, %162 : vector<4x512xi1>
    %c0_i32_71 = arith.constant 0 : i32
    %164 = vector.broadcast %c0_i32_71 : i32 to vector<4x512xi32>
    %165 = arith.cmpi sge, %158, %164 : vector<4x512xi32>
    %166 = arith.andi %163, %165 : vector<4x512xi1>
    %c16_i32_72 = arith.constant 16 : i32
    %167 = vector.broadcast %c16_i32_72 : i32 to vector<4x512xi32>
    %168 = arith.cmpi slt, %158, %167 : vector<4x512xi32>
    %169 = arith.andi %166, %168 : vector<4x512xi1>
    %cst_73 = arith.constant 0.000000e+00 : f32
    %170 = vector.broadcast %cst_73 : f32 to vector<4x512xf32>
    %171 = arith.select %169, %154, %170 : vector<4x512xi1>, vector<4x512xf32>
    %c32 = arith.constant 32 : index
    %c0_74 = arith.constant 0 : index
    %172 = vector.load %arg9[%c32, %c0_74] : memref<36x512xf32, #tpu.memory_space<vmem>>, vector<4x512xf32>
    tpu.vector_store %arg9[%c32, %c0_74], %171 {strides = array<i32>} : memref<36x512xf32, #tpu.memory_space<vmem>>, vector<4x512xf32>,
    %c0_75 = arith.constant 0 : index
    %c0_76 = arith.constant 0 : index
    %173 = vector.load %arg4[%c0_75, %c0_76] : memref<4x36xf32, #tpu.memory_space<vmem>>, vector<4x36xf32>
    %c0_77 = arith.constant 0 : index
    %c0_78 = arith.constant 0 : index
    %174 = vector.load %arg9[%c0_77, %c0_78] : memref<36x512xf32, #tpu.memory_space<vmem>>, vector<36x512xf32>
    %cst_79 = arith.constant dense<0.000000e+00> : vector<4x512xf32>
    %175 = tpu.matmul %173, %174, %cst_79 {dimension_numbers = #tpu.dot_dimension_numbers<[1], [0], [0], [1], [0, 0, 1, 1], [], []>} : vector<4x36xf32>, vector<36x512xf32>, vector<4x512xf32> -> vector<4x512xf32>
    %c0_80 = arith.constant 0 : index
    %c0_81 = arith.constant 0 : index
    %176 = vector.load %arg5[%c0_80, %c0_81] : memref<4x1xf32, #tpu.memory_space<vmem>>, vector<4x1xf32>
    %177 = vector.broadcast %176 : vector<4x1xf32> to vector<4x512xf32>
    %178 = arith.addf %175, %177 : vector<4x512xf32>
    %cst_82 = arith.constant 0.000000e+00 : f32
    %179 = vector.broadcast %cst_82 : f32 to vector<4x512xf32>
    %180 = arith.maximumf %178, %179 : vector<4x512xf32>
    %c17_i32_83 = arith.constant 17 : i32
    %181 = tpu.dynamic_rotate %180 by %c17_i32_83 dim 1 : vector<4x512xf32>, i32 -> vector<4x512xf32>
    %c-1_i32_84 = arith.constant -1 : i32
    %182 = vector.broadcast %c-1_i32_84 : i32 to vector<4x512xi32>
    %183 = arith.addi %0, %182 : vector<4x512xi32>
    %c-1_i32_85 = arith.constant -1 : i32
    %184 = vector.broadcast %c-1_i32_85 : i32 to vector<4x512xi32>
    %185 = arith.addi %1, %184 : vector<4x512xi32>
    %c0_i32_86 = arith.constant 0 : i32
    %186 = vector.broadcast %c0_i32_86 : i32 to vector<4x512xi32>
    %187 = arith.cmpi sge, %183, %186 : vector<4x512xi32>
    %c16_i32_87 = arith.constant 16 : i32
    %188 = vector.broadcast %c16_i32_87 : i32 to vector<4x512xi32>
    %189 = arith.cmpi slt, %183, %188 : vector<4x512xi32>
    %190 = arith.andi %187, %189 : vector<4x512xi1>
    %c0_i32_88 = arith.constant 0 : i32
    %191 = vector.broadcast %c0_i32_88 : i32 to vector<4x512xi32>
    %192 = arith.cmpi sge, %185, %191 : vector<4x512xi32>
    %193 = arith.andi %190, %192 : vector<4x512xi1>
    %c16_i32_89 = arith.constant 16 : i32
    %194 = vector.broadcast %c16_i32_89 : i32 to vector<4x512xi32>
    %195 = arith.cmpi slt, %185, %194 : vector<4x512xi32>
    %196 = arith.andi %193, %195 : vector<4x512xi1>
    %cst_90 = arith.constant 0.000000e+00 : f32
    %197 = vector.broadcast %cst_90 : f32 to vector<4x512xf32>
    %198 = arith.select %196, %181, %197 : vector<4x512xi1>, vector<4x512xf32>
    %c0_91 = arith.constant 0 : index
    %c0_92 = arith.constant 0 : index
    %199 = vector.load %arg9[%c0_91, %c0_92] : memref<36x512xf32, #tpu.memory_space<vmem>>, vector<4x512xf32>
    tpu.vector_store %arg9[%c0_91, %c0_92], %198 {strides = array<i32>} : memref<36x512xf32, #tpu.memory_space<vmem>>, vector<4x512xf32>,
    %c16_i32_93 = arith.constant 16 : i32
    %200 = tpu.dynamic_rotate %180 by %c16_i32_93 dim 1 : vector<4x512xf32>, i32 -> vector<4x512xf32>
    %c-1_i32_94 = arith.constant -1 : i32
    %201 = vector.broadcast %c-1_i32_94 : i32 to vector<4x512xi32>
    %202 = arith.addi %0, %201 : vector<4x512xi32>
    %c0_i32_95 = arith.constant 0 : i32
    %203 = vector.broadcast %c0_i32_95 : i32 to vector<4x512xi32>
    %204 = arith.addi %1, %203 : vector<4x512xi32>
    %c0_i32_96 = arith.constant 0 : i32
    %205 = vector.broadcast %c0_i32_96 : i32 to vector<4x512xi32>
    %206 = arith.cmpi sge, %202, %205 : vector<4x512xi32>
    %c16_i32_97 = arith.constant 16 : i32
    %207 = vector.broadcast %c16_i32_97 : i32 to vector<4x512xi32>
    %208 = arith.cmpi slt, %202, %207 : vector<4x512xi32>
    %209 = arith.andi %206, %208 : vector<4x512xi1>
    %c0_i32_98 = arith.constant 0 : i32
    %210 = vector.broadcast %c0_i32_98 : i32 to vector<4x512xi32>
    %211 = arith.cmpi sge, %204, %210 : vector<4x512xi32>
    %212 = arith.andi %209, %211 : vector<4x512xi1>
    %c16_i32_99 = arith.constant 16 : i32
    %213 = vector.broadcast %c16_i32_99 : i32 to vector<4x512xi32>
    %214 = arith.cmpi slt, %204, %213 : vector<4x512xi32>
    %215 = arith.andi %212, %214 : vector<4x512xi1>
    %cst_100 = arith.constant 0.000000e+00 : f32
    %216 = vector.broadcast %cst_100 : f32 to vector<4x512xf32>
    %217 = arith.select %215, %200, %216 : vector<4x512xi1>, vector<4x512xf32>
    %c4_101 = arith.constant 4 : index
    %c0_102 = arith.constant 0 : index
    %218 = vector.load %arg9[%c4_101, %c0_102] : memref<36x512xf32, #tpu.memory_space<vmem>>, vector<4x512xf32>
    tpu.vector_store %arg9[%c4_101, %c0_102], %217 {strides = array<i32>} : memref<36x512xf32, #tpu.memory_space<vmem>>, vector<4x512xf32>,
    %c15_i32_103 = arith.constant 15 : i32
    %219 = tpu.dynamic_rotate %180 by %c15_i32_103 dim 1 : vector<4x512xf32>, i32 -> vector<4x512xf32>
    %c-1_i32_104 = arith.constant -1 : i32
    %220 = vector.broadcast %c-1_i32_104 : i32 to vector<4x512xi32>
    %221 = arith.addi %0, %220 : vector<4x512xi32>
    %c1_i32_105 = arith.constant 1 : i32
    %222 = vector.broadcast %c1_i32_105 : i32 to vector<4x512xi32>
    %223 = arith.addi %1, %222 : vector<4x512xi32>
    %c0_i32_106 = arith.constant 0 : i32
    %224 = vector.broadcast %c0_i32_106 : i32 to vector<4x512xi32>
    %225 = arith.cmpi sge, %221, %224 : vector<4x512xi32>
    %c16_i32_107 = arith.constant 16 : i32
    %226 = vector.broadcast %c16_i32_107 : i32 to vector<4x512xi32>
    %227 = arith.cmpi slt, %221, %226 : vector<4x512xi32>
    %228 = arith.andi %225, %227 : vector<4x512xi1>
    %c0_i32_108 = arith.constant 0 : i32
    %229 = vector.broadcast %c0_i32_108 : i32 to vector<4x512xi32>
    %230 = arith.cmpi sge, %223, %229 : vector<4x512xi32>
    %231 = arith.andi %228, %230 : vector<4x512xi1>
    %c16_i32_109 = arith.constant 16 : i32
    %232 = vector.broadcast %c16_i32_109 : i32 to vector<4x512xi32>
    %233 = arith.cmpi slt, %223, %232 : vector<4x512xi32>
    %234 = arith.andi %231, %233 : vector<4x512xi1>
    %cst_110 = arith.constant 0.000000e+00 : f32
    %235 = vector.broadcast %cst_110 : f32 to vector<4x512xf32>
    %236 = arith.select %234, %219, %235 : vector<4x512xi1>, vector<4x512xf32>
    %c8_111 = arith.constant 8 : index
    %c0_112 = arith.constant 0 : index
    %237 = vector.load %arg9[%c8_111, %c0_112] : memref<36x512xf32, #tpu.memory_space<vmem>>, vector<4x512xf32>
    tpu.vector_store %arg9[%c8_111, %c0_112], %236 {strides = array<i32>} : memref<36x512xf32, #tpu.memory_space<vmem>>, vector<4x512xf32>,
    %c1_i32_113 = arith.constant 1 : i32
    %238 = tpu.dynamic_rotate %180 by %c1_i32_113 dim 1 : vector<4x512xf32>, i32 -> vector<4x512xf32>
    %c0_i32_114 = arith.constant 0 : i32
    %239 = vector.broadcast %c0_i32_114 : i32 to vector<4x512xi32>
    %240 = arith.addi %0, %239 : vector<4x512xi32>
    %c-1_i32_115 = arith.constant -1 : i32
    %241 = vector.broadcast %c-1_i32_115 : i32 to vector<4x512xi32>
    %242 = arith.addi %1, %241 : vector<4x512xi32>
    %c0_i32_116 = arith.constant 0 : i32
    %243 = vector.broadcast %c0_i32_116 : i32 to vector<4x512xi32>
    %244 = arith.cmpi sge, %240, %243 : vector<4x512xi32>
    %c16_i32_117 = arith.constant 16 : i32
    %245 = vector.broadcast %c16_i32_117 : i32 to vector<4x512xi32>
    %246 = arith.cmpi slt, %240, %245 : vector<4x512xi32>
    %247 = arith.andi %244, %246 : vector<4x512xi1>
    %c0_i32_118 = arith.constant 0 : i32
    %248 = vector.broadcast %c0_i32_118 : i32 to vector<4x512xi32>
    %249 = arith.cmpi sge, %242, %248 : vector<4x512xi32>
    %250 = arith.andi %247, %249 : vector<4x512xi1>
    %c16_i32_119 = arith.constant 16 : i32
    %251 = vector.broadcast %c16_i32_119 : i32 to vector<4x512xi32>
    %252 = arith.cmpi slt, %242, %251 : vector<4x512xi32>
    %253 = arith.andi %250, %252 : vector<4x512xi1>
    %cst_120 = arith.constant 0.000000e+00 : f32
    %254 = vector.broadcast %cst_120 : f32 to vector<4x512xf32>
    %255 = arith.select %253, %238, %254 : vector<4x512xi1>, vector<4x512xf32>
    %c12_121 = arith.constant 12 : index
    %c0_122 = arith.constant 0 : index
    %256 = vector.load %arg9[%c12_121, %c0_122] : memref<36x512xf32, #tpu.memory_space<vmem>>, vector<4x512xf32>
    tpu.vector_store %arg9[%c12_121, %c0_122], %255 {strides = array<i32>} : memref<36x512xf32, #tpu.memory_space<vmem>>, vector<4x512xf32>,
    %c0_i32_123 = arith.constant 0 : i32
    %257 = vector.broadcast %c0_i32_123 : i32 to vector<4x512xi32>
    %258 = arith.addi %0, %257 : vector<4x512xi32>
    %c0_i32_124 = arith.constant 0 : i32
    %259 = vector.broadcast %c0_i32_124 : i32 to vector<4x512xi32>
    %260 = arith.addi %1, %259 : vector<4x512xi32>
    %c0_i32_125 = arith.constant 0 : i32
    %261 = vector.broadcast %c0_i32_125 : i32 to vector<4x512xi32>
    %262 = arith.cmpi sge, %258, %261 : vector<4x512xi32>
    %c16_i32_126 = arith.constant 16 : i32
    %263 = vector.broadcast %c16_i32_126 : i32 to vector<4x512xi32>
    %264 = arith.cmpi slt, %258, %263 : vector<4x512xi32>
    %265 = arith.andi %262, %264 : vector<4x512xi1>
    %c0_i32_127 = arith.constant 0 : i32
    %266 = vector.broadcast %c0_i32_127 : i32 to vector<4x512xi32>
    %267 = arith.cmpi sge, %260, %266 : vector<4x512xi32>
    %268 = arith.andi %265, %267 : vector<4x512xi1>
    %c16_i32_128 = arith.constant 16 : i32
    %269 = vector.broadcast %c16_i32_128 : i32 to vector<4x512xi32>
    %270 = arith.cmpi slt, %260, %269 : vector<4x512xi32>
    %271 = arith.andi %268, %270 : vector<4x512xi1>
    %cst_129 = arith.constant 0.000000e+00 : f32
    %272 = vector.broadcast %cst_129 : f32 to vector<4x512xf32>
    %273 = arith.select %271, %180, %272 : vector<4x512xi1>, vector<4x512xf32>
    %c16_130 = arith.constant 16 : index
    %c0_131 = arith.constant 0 : index
    %274 = vector.load %arg9[%c16_130, %c0_131] : memref<36x512xf32, #tpu.memory_space<vmem>>, vector<4x512xf32>
    tpu.vector_store %arg9[%c16_130, %c0_131], %273 {strides = array<i32>} : memref<36x512xf32, #tpu.memory_space<vmem>>, vector<4x512xf32>,
    %c511_i32_132 = arith.constant 511 : i32
    %275 = tpu.dynamic_rotate %180 by %c511_i32_132 dim 1 : vector<4x512xf32>, i32 -> vector<4x512xf32>
    %c0_i32_133 = arith.constant 0 : i32
    %276 = vector.broadcast %c0_i32_133 : i32 to vector<4x512xi32>
    %277 = arith.addi %0, %276 : vector<4x512xi32>
    %c1_i32_134 = arith.constant 1 : i32
    %278 = vector.broadcast %c1_i32_134 : i32 to vector<4x512xi32>
    %279 = arith.addi %1, %278 : vector<4x512xi32>
    %c0_i32_135 = arith.constant 0 : i32
    %280 = vector.broadcast %c0_i32_135 : i32 to vector<4x512xi32>
    %281 = arith.cmpi sge, %277, %280 : vector<4x512xi32>
    %c16_i32_136 = arith.constant 16 : i32
    %282 = vector.broadcast %c16_i32_136 : i32 to vector<4x512xi32>
    %283 = arith.cmpi slt, %277, %282 : vector<4x512xi32>
    %284 = arith.andi %281, %283 : vector<4x512xi1>
    %c0_i32_137 = arith.constant 0 : i32
    %285 = vector.broadcast %c0_i32_137 : i32 to vector<4x512xi32>
    %286 = arith.cmpi sge, %279, %285 : vector<4x512xi32>
    %287 = arith.andi %284, %286 : vector<4x512xi1>
    %c16_i32_138 = arith.constant 16 : i32
    %288 = vector.broadcast %c16_i32_138 : i32 to vector<4x512xi32>
    %289 = arith.cmpi slt, %279, %288 : vector<4x512xi32>
    %290 = arith.andi %287, %289 : vector<4x512xi1>
    %cst_139 = arith.constant 0.000000e+00 : f32
    %291 = vector.broadcast %cst_139 : f32 to vector<4x512xf32>
    %292 = arith.select %290, %275, %291 : vector<4x512xi1>, vector<4x512xf32>
    %c20_140 = arith.constant 20 : index
    %c0_141 = arith.constant 0 : index
    %293 = vector.load %arg9[%c20_140, %c0_141] : memref<36x512xf32, #tpu.memory_space<vmem>>, vector<4x512xf32>
    tpu.vector_store %arg9[%c20_140, %c0_141], %292 {strides = array<i32>} : memref<36x512xf32, #tpu.memory_space<vmem>>, vector<4x512xf32>,
    %c497_i32_142 = arith.constant 497 : i32
    %294 = tpu.dynamic_rotate %180 by %c497_i32_142 dim 1 : vector<4x512xf32>, i32 -> vector<4x512xf32>
    %c1_i32_143 = arith.constant 1 : i32
    %295 = vector.broadcast %c1_i32_143 : i32 to vector<4x512xi32>
    %296 = arith.addi %0, %295 : vector<4x512xi32>
    %c-1_i32_144 = arith.constant -1 : i32
    %297 = vector.broadcast %c-1_i32_144 : i32 to vector<4x512xi32>
    %298 = arith.addi %1, %297 : vector<4x512xi32>
    %c0_i32_145 = arith.constant 0 : i32
    %299 = vector.broadcast %c0_i32_145 : i32 to vector<4x512xi32>
    %300 = arith.cmpi sge, %296, %299 : vector<4x512xi32>
    %c16_i32_146 = arith.constant 16 : i32
    %301 = vector.broadcast %c16_i32_146 : i32 to vector<4x512xi32>
    %302 = arith.cmpi slt, %296, %301 : vector<4x512xi32>
    %303 = arith.andi %300, %302 : vector<4x512xi1>
    %c0_i32_147 = arith.constant 0 : i32
    %304 = vector.broadcast %c0_i32_147 : i32 to vector<4x512xi32>
    %305 = arith.cmpi sge, %298, %304 : vector<4x512xi32>
    %306 = arith.andi %303, %305 : vector<4x512xi1>
    %c16_i32_148 = arith.constant 16 : i32
    %307 = vector.broadcast %c16_i32_148 : i32 to vector<4x512xi32>
    %308 = arith.cmpi slt, %298, %307 : vector<4x512xi32>
    %309 = arith.andi %306, %308 : vector<4x512xi1>
    %cst_149 = arith.constant 0.000000e+00 : f32
    %310 = vector.broadcast %cst_149 : f32 to vector<4x512xf32>
    %311 = arith.select %309, %294, %310 : vector<4x512xi1>, vector<4x512xf32>
    %c24_150 = arith.constant 24 : index
    %c0_151 = arith.constant 0 : index
    %312 = vector.load %arg9[%c24_150, %c0_151] : memref<36x512xf32, #tpu.memory_space<vmem>>, vector<4x512xf32>
    tpu.vector_store %arg9[%c24_150, %c0_151], %311 {strides = array<i32>} : memref<36x512xf32, #tpu.memory_space<vmem>>, vector<4x512xf32>,
    %c496_i32_152 = arith.constant 496 : i32
    %313 = tpu.dynamic_rotate %180 by %c496_i32_152 dim 1 : vector<4x512xf32>, i32 -> vector<4x512xf32>
    %c1_i32_153 = arith.constant 1 : i32
    %314 = vector.broadcast %c1_i32_153 : i32 to vector<4x512xi32>
    %315 = arith.addi %0, %314 : vector<4x512xi32>
    %c0_i32_154 = arith.constant 0 : i32
    %316 = vector.broadcast %c0_i32_154 : i32 to vector<4x512xi32>
    %317 = arith.addi %1, %316 : vector<4x512xi32>
    %c0_i32_155 = arith.constant 0 : i32
    %318 = vector.broadcast %c0_i32_155 : i32 to vector<4x512xi32>
    %319 = arith.cmpi sge, %315, %318 : vector<4x512xi32>
    %c16_i32_156 = arith.constant 16 : i32
    %320 = vector.broadcast %c16_i32_156 : i32 to vector<4x512xi32>
    %321 = arith.cmpi slt, %315, %320 : vector<4x512xi32>
    %322 = arith.andi %319, %321 : vector<4x512xi1>
    %c0_i32_157 = arith.constant 0 : i32
    %323 = vector.broadcast %c0_i32_157 : i32 to vector<4x512xi32>
    %324 = arith.cmpi sge, %317, %323 : vector<4x512xi32>
    %325 = arith.andi %322, %324 : vector<4x512xi1>
    %c16_i32_158 = arith.constant 16 : i32
    %326 = vector.broadcast %c16_i32_158 : i32 to vector<4x512xi32>
    %327 = arith.cmpi slt, %317, %326 : vector<4x512xi32>
    %328 = arith.andi %325, %327 : vector<4x512xi1>
    %cst_159 = arith.constant 0.000000e+00 : f32
    %329 = vector.broadcast %cst_159 : f32 to vector<4x512xf32>
    %330 = arith.select %328, %313, %329 : vector<4x512xi1>, vector<4x512xf32>
    %c28_160 = arith.constant 28 : index
    %c0_161 = arith.constant 0 : index
    %331 = vector.load %arg9[%c28_160, %c0_161] : memref<36x512xf32, #tpu.memory_space<vmem>>, vector<4x512xf32>
    tpu.vector_store %arg9[%c28_160, %c0_161], %330 {strides = array<i32>} : memref<36x512xf32, #tpu.memory_space<vmem>>, vector<4x512xf32>,
    %c495_i32_162 = arith.constant 495 : i32
    %332 = tpu.dynamic_rotate %180 by %c495_i32_162 dim 1 : vector<4x512xf32>, i32 -> vector<4x512xf32>
    %c1_i32_163 = arith.constant 1 : i32
    %333 = vector.broadcast %c1_i32_163 : i32 to vector<4x512xi32>
    %334 = arith.addi %0, %333 : vector<4x512xi32>
    %c1_i32_164 = arith.constant 1 : i32
    %335 = vector.broadcast %c1_i32_164 : i32 to vector<4x512xi32>
    %336 = arith.addi %1, %335 : vector<4x512xi32>
    %c0_i32_165 = arith.constant 0 : i32
    %337 = vector.broadcast %c0_i32_165 : i32 to vector<4x512xi32>
    %338 = arith.cmpi sge, %334, %337 : vector<4x512xi32>
    %c16_i32_166 = arith.constant 16 : i32
    %339 = vector.broadcast %c16_i32_166 : i32 to vector<4x512xi32>
    %340 = arith.cmpi slt, %334, %339 : vector<4x512xi32>
    %341 = arith.andi %338, %340 : vector<4x512xi1>
    %c0_i32_167 = arith.constant 0 : i32
    %342 = vector.broadcast %c0_i32_167 : i32 to vector<4x512xi32>
    %343 = arith.cmpi sge, %336, %342 : vector<4x512xi32>
    %344 = arith.andi %341, %343 : vector<4x512xi1>
    %c16_i32_168 = arith.constant 16 : i32
    %345 = vector.broadcast %c16_i32_168 : i32 to vector<4x512xi32>
    %346 = arith.cmpi slt, %336, %345 : vector<4x512xi32>
    %347 = arith.andi %344, %346 : vector<4x512xi1>
    %cst_169 = arith.constant 0.000000e+00 : f32
    %348 = vector.broadcast %cst_169 : f32 to vector<4x512xf32>
    %349 = arith.select %347, %332, %348 : vector<4x512xi1>, vector<4x512xf32>
    %c32_170 = arith.constant 32 : index
    %c0_171 = arith.constant 0 : index
    %350 = vector.load %arg9[%c32_170, %c0_171] : memref<36x512xf32, #tpu.memory_space<vmem>>, vector<4x512xf32>
    tpu.vector_store %arg9[%c32_170, %c0_171], %349 {strides = array<i32>} : memref<36x512xf32, #tpu.memory_space<vmem>>, vector<4x512xf32>,
    %c0_172 = arith.constant 0 : index
    %c0_173 = arith.constant 0 : index
    %351 = vector.load %arg6[%c0_172, %c0_173] : memref<4x36xf32, #tpu.memory_space<vmem>>, vector<4x36xf32>
    %c0_174 = arith.constant 0 : index
    %c0_175 = arith.constant 0 : index
    %352 = vector.load %arg9[%c0_174, %c0_175] : memref<36x512xf32, #tpu.memory_space<vmem>>, vector<36x512xf32>
    %cst_176 = arith.constant dense<0.000000e+00> : vector<4x512xf32>
    %353 = tpu.matmul %351, %352, %cst_176 {dimension_numbers = #tpu.dot_dimension_numbers<[1], [0], [0], [1], [0, 0, 1, 1], [], []>} : vector<4x36xf32>, vector<36x512xf32>, vector<4x512xf32> -> vector<4x512xf32>
    %c0_177 = arith.constant 0 : index
    %c0_178 = arith.constant 0 : index
    %354 = vector.load %arg7[%c0_177, %c0_178] : memref<4x1xf32, #tpu.memory_space<vmem>>, vector<4x1xf32>
    %355 = vector.broadcast %354 : vector<4x1xf32> to vector<4x512xf32>
    %356 = arith.addf %353, %355 : vector<4x512xf32>
    %357 = arith.addf %356, %2 : vector<4x512xf32>
    %c0_179 = arith.constant 0 : index
    %c0_180 = arith.constant 0 : index
    %358 = vector.load %arg8[%c0_179, %c0_180] : memref<4x512xf32, #tpu.memory_space<vmem>>, vector<4x512xf32>
    tpu.vector_store %arg8[%c0_179, %c0_180], %357 {strides = array<i32>} : memref<4x512xf32, #tpu.memory_space<vmem>>, vector<4x512xf32>,
    return
  }
  func.func @transform_0(%arg0: i32) -> (i32, i32) {
    %c0_i32 = arith.constant 0 : i32
    %c0_i32_0 = arith.constant 0 : i32
    %c0_i32_1 = arith.constant 0 : i32
    return %c0_i32, %c0_i32_0 : i32, i32
  }
  func.func @transform_1(%arg0: i32) -> (i32, i32) {
    %c0_i32 = arith.constant 0 : i32
    %c0_i32_0 = arith.constant 0 : i32
    %c0_i32_1 = arith.constant 0 : i32
    return %c0_i32, %c0_i32_0 : i32, i32
  }
  func.func @transform_2(%arg0: i32) -> (i32, i32) {
    %c0_i32 = arith.constant 0 : i32
    %c0_i32_0 = arith.constant 0 : i32
    return %c0_i32, %arg0 : i32, i32
  }
  func.func @transform_3(%arg0: i32) -> (i32, i32) {
    %c0_i32 = arith.constant 0 : i32
    %c0_i32_0 = arith.constant 0 : i32
    %c0_i32_1 = arith.constant 0 : i32
    return %c0_i32, %c0_i32_0 : i32, i32
  }
  func.func @transform_4(%arg0: i32) -> (i32, i32) {
    %c0_i32 = arith.constant 0 : i32
    %c0_i32_0 = arith.constant 0 : i32
    %c0_i32_1 = arith.constant 0 : i32
    return %c0_i32, %c0_i32_0 : i32, i32
  }
  func.func @transform_5(%arg0: i32) -> (i32, i32) {
    %c0_i32 = arith.constant 0 : i32
    %c0_i32_0 = arith.constant 0 : i32
    %c0_i32_1 = arith.constant 0 : i32
    return %c0_i32, %c0_i32_0 : i32, i32
  }
  func.func @transform_6(%arg0: i32) -> (i32, i32) {
    %c0_i32 = arith.constant 0 : i32
    %c0_i32_0 = arith.constant 0 : i32
    %c0_i32_1 = arith.constant 0 : i32
    return %c0_i32, %c0_i32_0 : i32, i32
  }
  func.func @transform_7(%arg0: i32) -> (i32, i32) {
    %c0_i32 = arith.constant 0 : i32
    %c0_i32_0 = arith.constant 0 : i32
    return %c0_i32, %arg0 : i32, i32
  }
}

</mosaic_0001>

<bundles_post_ra>
// kernel: tpu_custom_call.1
= control target key start
LH: loop header
LB: loop body
LE: loop exit
PB: predicated region body
PF: predicated region fallthrough
CT: control target
= control target key end

     0   :  { %12 = vsyncpa [#allocation4], 0  ;;  %s1918_s0 = inlined_call_operand.hbm [shape: s32[4,512], index: 0, kind: input, shape index: {}]   ;;  %s1919_s1 = inlined_call_operand.hbm [shape: s32[4,512], index: 1, kind: input, shape index: {}]   ;;  %s1920_s2 = inlined_call_operand.vmem [shape: f32[4,512], index: 2, kind: input, shape index: {}]   ;;  %s1921_s3 = inlined_call_operand.vmem [shape: f32[4,36], index: 3, kind: input, shape index: {}]   ;;  %s1922_s4 = inlined_call_operand.vmem [shape: f32[4,1], index: 4, kind: input, shape index: {}]   ;;  %s1923_s5 = inlined_call_operand.vmem [shape: f32[4,36], index: 5, kind: input, shape index: {}]   ;;  %s1924_s6 = inlined_call_operand.vmem [shape: f32[4,1], index: 6, kind: input, shape index: {}]   ;;  %s1925_s7 = inlined_call_operand.hbm [shape: f32[4,512], index: 7, kind: output, shape index: {}]  }
   0x1   :  { %13 = vsyncpa [#allocation7], 0 }
   0x2   :  { %14 = vsyncpa [#allocation5], 0  ;;  %s1229_s24 = smov [#allocation3]   ;;  %s1230_s26 = smov [#allocation6]  }
   0x3   :  { %s21_s25 = sshll.u32 %s1229_s24, 4  ;;  %s31_s27 = sshll.u32 %s1230_s26, 4  ;;  %s22_s25 = int_to_ptr.vmem [resolvable:$true] %s21_s25  ;;  %s32_s27 = int_to_ptr.vmem [resolvable:$true] %s31_s27 }
   0x4   :  { %s1157_s30 = scalar_lea.hbm %s1918_s0, 256 }
   0x5   :  { %p1158_p0 = scmp.ne.s32.totalorder %s1918_s0, %s1157_s30  ;;  %p1161_p1 = scmp.lt.u32.totalorder %s1157_s30, %s1918_s0 }
   0x7   :  { %p1163_p2 = pnand %p1161_p1, %p1158_p0 }
   0x9   :  { %1166 = shalt.err (!%p1163_p2)
}
   0xa   :  { %s1167_s12 = scalar_lea.vmem %s22_s25, 256  ;;  %p1172_p4 = scmp.lt.s32.totalorder %s22_s25, %s22_s25 }
   0xb   :  { %p1168_p3 = scmp.ne.s32.totalorder %s22_s25, %s1167_s12  ;;  %p1173_p5 = scmp.lt.s32.totalorder %s1167_s12, %s1167_s12 }
   0xd   :  { %p1174_p6 = por %p1173_p5, %p1172_p4 }
   0xf   :  { %p1175_p7 = pnand %p1174_p6, %p1168_p3 }
  0x11   :  { %1178 = shalt.err (!%p1175_p7)
}
  0x12   :  { %24 = dma.hbm_to_vmem [thread:$0]  %s1918_s0, 256, %s22_s25, [#allocation4]  }
  0x13   :  { %s1179_s17 = scalar_lea.hbm %s1919_s1, 256 }
  0x14   :  { %p1180_p8 = scmp.ne.s32.totalorder %s1919_s1, %s1179_s17  ;;  %p1183_p9 = scmp.lt.u32.totalorder %s1179_s17, %s1919_s1 }
  0x16   :  { %p1185_p10 = pnand %p1183_p9, %p1180_p8 }
  0x18   :  { %1188 = shalt.err (!%p1185_p10)
}
  0x19   :  { %s1189_s22 = scalar_lea.vmem %s32_s27, 256  ;;  %p1194_p12 = scmp.lt.s32.totalorder %s32_s27, %s32_s27 }
  0x1a   :  { %p1190_p11 = scmp.ne.s32.totalorder %s32_s27, %s1189_s22  ;;  %p1195_p13 = scmp.lt.s32.totalorder %s1189_s22, %s1189_s22 }
  0x1c   :  { %p1196_p0 = por %p1195_p13, %p1194_p12 }
  0x1e   :  { %p1197_p1 = pnand %p1196_p0, %p1190_p11 }
  0x20   :  { %1200 = shalt.err (!%p1197_p1)
}
  0x21   :  { %34 = dma.hbm_to_vmem [thread:$0]  %s1919_s1, 256, %s32_s27, [#allocation7]  }
  0x22   :  { %1223 = dma.done.wait [#allocation4], 256  }
  0x23   :  { %1224 = vsyncadd [#allocation4], 4294967040 }
  0x24   :  { %1225 = dma.done.wait [#allocation7], 256  }
  0x25   :  { %1226 = vsyncadd [#allocation7], 4294967040  ;;  %v1309_v0 = vld [vmem:[%s1920_s2 + $0x8] sm:$0xff]  ;;  %v1314_v1 = vld [vmem:[%s1920_s2] sm:$0xff]  ;;  %s1231_s29 = smov 17   ;;  %s1232_s1 = smov 15   ;;  %v71_v47 = vlaneseq }
  0x26   :  { %v1316_v2 = vld [vmem:[#allocation3] sm:$0xff]  ;;  %67 = vrot.lane.b32.xlu1 %v1309_v0, %s1231_s29  ;;  %63 = vrot.lane.b32.xlu0 %v1314_v1, %s1231_s29  ;;  %v1324_v3 = vcombine.high %v1309_v0, %v1309_v0  ;;  %v52_v4 = vld [vmem:[#allocation3 + $0x8] sm:$0xff]  ;;  %v1326_v5 = vld [vmem:[#allocation6] sm:$0xff]  ;;  %v1352_v13 = vcombine.high %v1314_v1, %v1314_v1  ;;  %v1968_v19 = vmov 0  ;;  %v1970_v20 = vmov 0  ;;  %s1233_s27 = smov 16  }
  0x27   :  { %v1328_v6 = vld [vmem:[#allocation6 + $0x8] sm:$0xff]  ;;  %v78_v7 = vadd.s32 4294967295, %v1316_v2  ;;  %v79_v8 = vadd.s32 4294967295, %v52_v4  ;;  %v1332_v9 = vadd.s32 4294967295, %v1326_v5  ;;  %v1338_v11 = vadd.s32 1, %v1326_v5  ;;  %s1234_s30 = smov 1  }
  0x28   :  { %v1335_v10 = vadd.s32 4294967295, %v1328_v6  ;;  %v1360_v15 = vadd.s32 1, %v1328_v6  ;;  %v1972_v21 = vmov 0  ;;  %v1977_v23 = vmov 0  ;;  %s1235_s8 = smov 113   ;;  %s1236_s9 = smov 127  }
  0x29   :  { %vm82_vm0 = vcmp.ge.s32.totalorder %v78_v7, 0  ;;  %vm84_vm1 = vcmp.lt.s32.totalorder %v78_v7, 16  ;;  %vm83_vm2 = vcmp.ge.s32.totalorder %v79_v8, 0  ;;  %vm85_vm3 = vcmp.lt.s32.totalorder %v79_v8, 16  ;;  %s1237_s10 = smov 112   ;;  %s1238_s11 = smov 111  }
  0x2a   :  { %vm1340_vm4 = vmand %vm82_vm0, %vm84_vm1  ;;  %vm1937_vm5 = vcmp.ge.s32.totalorder %v1332_v9, 0  ;;  %vm1930_vm6 = vcmp.ge.s32.totalorder %v1335_v10, 0  ;;  %69 = vrot.lane.b32.xlu1 %v1324_v3, %s1231_s29  ;;  %157 = vrot.lane.b32.xlu0 %v1314_v1, %s1232_s1  ;;  %vm1932_vm8 = vcmp.lt.s32.totalorder %v1332_v9, 16  ;;  %vm1926_vm10 = vcmp.lt.s32.totalorder %v1335_v10, 16  ;;  %v436_v45 = vld [vmem:[%s1922_s4] sm:$0xf] }
  0x2b   :  { %vm1354_vm7 = vmand %vm83_vm2, %vm85_vm3  ;;  %vm1929_vm12 = vcmp.ge.s32.totalorder %v1338_v11, 0  ;;  %vm1927_vm14 = vcmp.lt.s32.totalorder %v1338_v11, 16  ;;  %vm1928_vm0 = vcmp.ge.s32.totalorder %v1360_v15, 0  ;;  %vm1931_vm2 = vcmp.lt.s32.totalorder %v1360_v15, 16  ;;  %s1241_s20 = smov [#allocation8]  }
  0x2c   :  { %vm90_vm9 = vmand %vm1340_vm4, %vm1937_vm5  ;;  %v309_v25 = vadd.s32 1, %v1316_v2  ;;  %v310_v26 = vadd.s32 1, %v52_v4  ;;  %v1983_v27 = vmov 0  ;;  %v1987_v30 = vmov 0  ;;  %s1085_s21 = sshll.u32 %s1241_s20, 4  ;;  %s1086_s21 = int_to_ptr.vmem [resolvable:$true] %s1085_s21 }
  0x2d   :  { %vm91_vm11 = vmand %vm1354_vm7, %vm1930_vm6  ;;  %v1991_v31 = vmov 0  ;;  %v2000_v36 = vmov 0  ;;  %v2024_v42 = vmov 0  ;;  %v2027_v43 = vmov 0  ;;  %s1201_s22 = scalar_lea.vmem %s1086_s21, 256  ;;  %p1206_p3 = scmp.lt.s32.totalorder %s1086_s21, %s1086_s21 }
  0x2e   :  { %vm1374_vm13 = vmand %vm90_vm9, %vm1932_vm8  ;;  %159 = vrot.lane.b32.xlu1 %v1352_v13, %s1232_s1  ;;  %65 = vrot.lane.b32.xlu0 %v1352_v13, %s1231_s29  ;;  %vm1935_vm9 = vcmp.ge.s32.totalorder %v1326_v5, 0  ;;  %vm215_vm8 = vcmp.lt.s32.totalorder %v1316_v2, 16  ;;  %v1239_v44 = vmov 0.0   ;;  %v1240_v46 = vmov 0   ;;  %p1202_p2 = scmp.ne.s32.totalorder %s1086_s21, %s1201_s22  ;;  %p1207_p4 = scmp.lt.s32.totalorder %s1201_s22, %s1201_s22 }
  0x2f   :  { %vm1385_vm15 = vmand %vm91_vm11, %vm1926_vm10  ;;  %vm1934_vm10 = vcmp.lt.s32.totalorder %v1326_v5, 16  ;;  %523 = vmatprep.mubr.f32.mxu0 %v1239_v44  ;;  %594 = vmatprep.mubr.f32.mxu1 %v1239_v44  ;;  %v1637_v50 = vand.u32 127, %v71_v47 }
  0x30   :  { %vm174_vm1 = vmand %vm1340_vm4, %vm1929_vm12  ;;  %vm1938_vm12 = vcmp.lt.s32.totalorder %v1328_v6, 16  ;;  %1152 = vset.pattern.permute.xlu0 %v1240_v46  ;;  %p1208_p5 = por %p1207_p4, %p1206_p3 }
  0x31   :  { %vm1397_vm3 = vmand %vm174_vm1, %vm1927_vm14  ;;  %vm1933_vm14 = vcmp.ge.s32.totalorder %v1328_v6, 0 }
  0x32   :  { %vm175_vm11 = vmand %vm1354_vm7, %vm1928_vm0  ;;  %163 = vrot.lane.b32.xlu1 %v1324_v3, %s1232_s1  ;;  %161 = vrot.lane.b32.xlu0 %v1309_v0, %s1232_s1  ;;  %p1209_p6 = pnand %p1208_p5, %p1202_p2 }
  0x33   :  { %vm1413_vm1 = vmand %vm175_vm11, %vm1931_vm2  ;;  %vm213_vm2 = vcmp.ge.s32.totalorder %v1316_v2, 0 }
  0x34   :  { %v1969_v19 = vsel %vm1413_vm1, 4294967295, %v1968_v19  ;;  %vm131_vm0 = vmand %vm1340_vm4, %vm1935_vm9  ;;  %vm1976_vm9 = vcmp.lt.s32.totalorder %v1332_v9, 16 }
  0x35   :  { %vm1425_vm6 = vmand %vm131_vm0, %vm1934_vm10 }
  0x36   :  { %v1971_v20 = vsel %vm1425_vm6, 4294967295, %v1970_v20  ;;  %vm132_vm11 = vmand %vm1354_vm7, %vm1933_vm14  ;;  %118 = vrot.lane.b32.xlu1 %v1352_v13, %s1233_s27  ;;  %116 = vrot.lane.b32.xlu0 %v1314_v1, %s1233_s27  ;;  %vm214_vm7 = vcmp.ge.s32.totalorder %v52_v4, 0  ;;  %vm216_vm14 = vcmp.lt.s32.totalorder %v52_v4, 16 }
  0x37   :  { %vm1441_vm4 = vmand %vm132_vm11, %vm1938_vm12  ;;  %vm1989_vm12 = vcmp.ge.s32.totalorder %v1328_v6, 0 }
  0x38   :  { %v1973_v21 = vsel %vm1441_vm4, 4294967295, %v1972_v21  ;;  %vm1445_vm0 = vmand %vm213_vm2, %vm215_vm8  ;;  %vm1981_vm2 = vcmp.ge.s32.totalorder %v1326_v5, 0  ;;  %vm1990_vm4 = vcmp.lt.s32.totalorder %v1328_v6, 16 }
  0x39   :  { %vm219_vm10 = vmand %vm1445_vm0, %vm1937_vm5  ;;  %vm313_vm5 = vcmp.lt.s32.totalorder %v309_v25, 16 }
  0x3a   :  { %vm1455_vm6 = vmand %vm219_vm10, %vm1976_vm9  ;;  %122 = vrot.lane.b32.xlu1 %v1324_v3, %s1233_s27  ;;  %120 = vrot.lane.b32.xlu0 %v1309_v0, %s1233_s27  ;;  %vm1982_vm10 = vcmp.lt.s32.totalorder %v1326_v5, 16 }
  0x3b   :  { %v1978_v23 = vsel %vm1455_vm6, 4294967295, %v1977_v23  ;;  %vm1463_vm8 = vmand %vm214_vm7, %vm216_vm14  ;;  %vm1985_vm14 = vcmp.ge.s32.totalorder %v1335_v10, 0  ;;  %vm314_vm6 = vcmp.lt.s32.totalorder %v310_v26, 16 }
  0x3c   :  { %vm243_vm11 = vmand %vm1445_vm0, %vm1981_vm2  ;;  %vm1986_vm2 = vcmp.lt.s32.totalorder %v1335_v10, 16 }
  0x3d   :  { %vm1474_vm9 = vmand %vm243_vm11, %vm1982_vm10  ;;  %vm311_vm10 = vcmp.ge.s32.totalorder %v309_v25, 0 }
  0x3e   :  { %v1984_v27 = vsel %vm1474_vm9, 4294967295, %v1983_v27  ;;  %v247_v28 = vsel %vm1474_vm9, %v1314_v1, 0.0  ;;  %vm220_vm7 = vmand %vm1463_vm8, %vm1985_vm14  ;;  %202 = vrot.lane.b32.xlu1 %v1352_v13, %s1234_s30  ;;  %200 = vrot.lane.b32.xlu0 %v1314_v1, %s1234_s30  ;;  %vm312_vm9 = vcmp.ge.s32.totalorder %v310_v26, 0 }
  0x3f   :  { %v251_v29 = vcombine.high %v247_v28, %v247_v28  ;;  %255 = vst [vmem:[#allocation2 + $0x40] sm:$0xf] %v247_v28  ;;  %vm1491_vm11 = vmand %vm220_vm7, %vm1986_vm2  ;;  %vm1998_vm2 = vcmp.ge.s32.totalorder %v1335_v10, 0 }
  0x40   :  { %v1988_v30 = vsel %vm1491_vm11, 4294967295, %v1987_v30  ;;  %vm244_vm14 = vmand %vm1463_vm8, %vm1989_vm12 }
  0x41   :  { %256 = vst [vmem:[#allocation2 + $0x48] sm:$0xf] %v251_v29  ;;  %vm1501_vm1 = vmand %vm244_vm14, %vm1990_vm4  ;;  %vm1997_vm4 = vcmp.ge.s32.totalorder %v1332_v9, 0  ;;  %vm1999_vm14 = vcmp.lt.s32.totalorder %v1332_v9, 16 }
  0x42   :  { %v1992_v31 = vsel %vm1501_vm1, 4294967295, %v1991_v31  ;;  %v248_v32 = vsel %vm1501_vm1, %v1309_v0, 0.0  ;;  %vm1508_vm7 = vmand %vm311_vm10, %vm313_vm5  ;;  %206 = vrot.lane.b32.xlu1 %v1324_v3, %s1234_s30  ;;  %204 = vrot.lane.b32.xlu0 %v1309_v0, %s1234_s30 }
  0x43   :  { %v252_v34 = vcombine.high %v248_v32, %v248_v32  ;;  %257 = vst [vmem:[#allocation2 + $0x50] sm:$0xf] %v248_v32  ;;  %vm1516_vm12 = vmand %vm312_vm9, %vm314_vm6  ;;  %vm2002_vm6 = vcmp.lt.s32.totalorder %v1335_v10, 16 }
  0x44   :  { %vm317_vm5 = vmand %vm1508_vm7, %vm1997_vm4  ;;  %vm2005_vm4 = vcmp.ge.s32.totalorder %v1338_v11, 0 }
  0x45   :  { %258 = vst [vmem:[#allocation2 + $0x58] sm:$0xf] %v252_v34  ;;  %vm318_vm10 = vmand %vm1516_vm12, %vm1998_vm2  ;;  %vm2006_vm2 = vcmp.ge.s32.totalorder %v1360_v15, 0 }
  0x46   :  { %vm1530_vm1 = vmand %vm317_vm5, %vm1999_vm14  ;;  %298 = vrot.lane.b32.xlu1 %v1352_v13, %s1235_s8  ;;  %296 = vrot.lane.b32.xlu0 %v1314_v1, %s1235_s8 }
  0x47   :  { %v2001_v36 = vsel %vm1530_vm1, 4294967295, %v2000_v36  ;;  %vm1540_vm9 = vmand %vm318_vm10, %vm2002_vm6  ;;  %vm2007_vm1 = vcmp.lt.s32.totalorder %v1338_v11, 16  ;;  %vm2010_vm10 = vcmp.lt.s32.totalorder %v1360_v15, 16  ;;  %vm2014_vm6 = vcmp.ge.s32.totalorder %v1328_v6, 0 }
  0x48   :  { %vm272_vm5 = vmand %vm1445_vm0, %vm2005_vm4 }
  0x49   :  { %vm273_vm14 = vmand %vm1463_vm8, %vm2006_vm2  ;;  %vm2013_vm8 = vcmp.ge.s32.totalorder %v1326_v5, 0 }
  0x4a   :  { %vm1554_vm11 = vmand %vm272_vm5, %vm2007_vm1  ;;  %302 = vrot.lane.b32.xlu1 %v1324_v3, %s1235_s8  ;;  %300 = vrot.lane.b32.xlu0 %v1309_v0, %s1235_s8  ;;  %vm2015_vm5 = vcmp.lt.s32.totalorder %v1326_v5, 16 }
  0x4b   :  { %vm1564_vm0 = vmand %vm273_vm14, %vm2010_vm10  ;;  %vm2018_vm14 = vcmp.lt.s32.totalorder %v1328_v6, 16 }
  0x4c   :  { %vm354_vm1 = vmand %vm1508_vm7, %vm2013_vm8  ;;  %vm2021_vm8 = vcmp.ge.s32.totalorder %v1338_v11, 0 }
  0x4d   :  { %vm355_vm4 = vmand %vm1516_vm12, %vm2014_vm6  ;;  %vm2022_vm6 = vcmp.ge.s32.totalorder %v1360_v15, 0 }
  0x4e   :  { %261 = vrot.lane.b32.xlu1 %v1352_v13, %s1236_s9  ;;  %259 = vrot.lane.b32.xlu0 %v1314_v1, %s1236_s9  ;;  %vm1582_vm2 = vmand %vm354_vm1, %vm2015_vm5  ;;  %vm2023_vm5 = vcmp.lt.s32.totalorder %v1338_v11, 16 }
  0x4f   :  { %vm1588_vm10 = vmand %vm355_vm4, %vm2018_vm14 }
  0x50   :  { %vm391_vm1 = vmand %vm1508_vm7, %vm2021_vm8  ;;  %vm2026_vm7 = vcmp.lt.s32.totalorder %v1360_v15, 16 }
  0x51   :  { %vm392_vm4 = vmand %vm1516_vm12, %vm2022_vm6  ;;  %vm1948_vm12 = vcmp.lt.s32.totalorder %v1637_v50, 17  ;;  %vm2029_vm6 = vnez %v1969_v19 }
  0x52   :  { %265 = vrot.lane.b32.xlu1 %v1324_v3, %s1236_s9  ;;  %263 = vrot.lane.b32.xlu0 %v1309_v0, %s1236_s9  ;;  %vm1610_vm14 = vmand %vm391_vm1, %vm2023_vm5  ;;  %vm1946_vm1 = vcmp.lt.s32.totalorder %v1637_v50, 15  ;;  %vm2030_vm5 = vnez %v1971_v20 }
  0x53   :  { %v2025_v42 = vsel %vm1610_vm14, 4294967295, %v2024_v42  ;;  %vm1616_vm8 = vmand %vm392_vm4, %vm2026_vm7  ;;  %vm1947_vm4 = vcmp.lt.s32.totalorder %v1637_v50, 16  ;;  %vm2031_vm7 = vnez %v1973_v21 }
  0x54   :  { %v2028_v43 = vsel %vm1616_vm8, 4294967295, %v2027_v43 }
  0x56   :  { %343 = vrot.lane.b32.xlu1 %v1352_v13, %s1237_s10  ;;  %341 = vrot.lane.b32.xlu0 %v1314_v1, %s1237_s10 }
  0x5a   :  { %347 = vrot.lane.b32.xlu1 %v1324_v3, %s1237_s10  ;;  %345 = vrot.lane.b32.xlu0 %v1309_v0, %s1237_s10 }
  0x5e   :  { %380 = vrot.lane.b32.xlu1 %v1352_v13, %s1238_s11  ;;  %378 = vrot.lane.b32.xlu0 %v1314_v1, %s1238_s11 }
  0x62   :  { %384 = vrot.lane.b32.xlu1 %v1324_v3, %s1238_s11  ;;  %382 = vrot.lane.b32.xlu0 %v1309_v0, %s1238_s11 }
  0x66   :  { %439 = vperm.xlu0 %1152, %v436_v45  }
  0x98   :  { %v68_v48 = vpop.permute.xlu1 %67  ;;  %v64_v49 = vpop.permute.xlu0 %63 }
  0x9c   :  { %v70_v51 = vpop.permute.xlu1 %69  ;;  %v158_v52 = vpop.permute.xlu0 %157 }
  0x9d   :  { %v74_v55 = vsel %vm1948_vm12, %v68_v48, %v70_v51  ;;  %v77_v56 = vsel %vm1948_vm12, %v70_v51, %v64_v49 }
  0xa0   :  { %v160_v53 = vpop.permute.xlu1 %159  ;;  %v66_v54 = vpop.permute.xlu0 %65 }
  0xa1   :  { %v75_v57 = vsel %vm1948_vm12, %v66_v54, %v68_v48  ;;  %v76_v58 = vsel %vm1948_vm12, %v64_v49, %v66_v54  ;;  %v168_v61 = vsel %vm1946_vm1, %v158_v52, %v160_v53  ;;  %vm2033_vm12 = vnez %v1988_v30 }
  0xa2   :  { %v100_v59 = vcombine.low %v77_v56, %v76_v58  ;;  %v101_v60 = vcombine.low %v75_v57, %v74_v55 }
  0xa4   :  { %v104_v62 = vsel %vm1374_vm13, %v100_v59, 0.0  ;;  %v105_v63 = vsel %vm1385_vm15, %v101_v60, 0.0  ;;  %v164_v0 = vpop.permute.xlu1 %163  ;;  %v162_v1 = vpop.permute.xlu0 %161 }
  0xa5   :  { %v108_v2 = vcombine.high %v104_v62, %v104_v62  ;;  %v109_v4 = vcombine.high %v105_v63, %v105_v63  ;;  %112 = vst [vmem:[#allocation2] sm:$0xf] %v104_v62  ;;  %114 = vst [vmem:[#allocation2 + $0x10] sm:$0xf] %v105_v63  ;;  %v169_v5 = vsel %vm1946_vm1, %v164_v0, %v158_v52 }
  0xa6   :  { %v166_v6 = vsel %vm1946_vm1, %v162_v1, %v164_v0  ;;  %v184_v7 = vcombine.low %v169_v5, %v168_v61  ;;  %v167_v8 = vsel %vm1946_vm1, %v160_v53, %v162_v1  ;;  %vm1949_vm1 = vcmp.lt.s32.totalorder %v1637_v50, 1 }
  0xa7   :  { %113 = vst [vmem:[#allocation2 + $0x8] sm:$0xf] %v108_v2  ;;  %115 = vst [vmem:[#allocation2 + $0x18] sm:$0xf] %v109_v4  ;;  %v185_v9 = vcombine.low %v167_v8, %v166_v6 }
  0xa8   :  { %v188_v10 = vsel %vm1397_vm3, %v184_v7, 0.0  ;;  %v119_v11 = vpop.permute.xlu1 %118  ;;  %v117_v12 = vpop.permute.xlu0 %116 }
  0xa9   :  { %v192_v14 = vcombine.high %v188_v10, %v188_v10  ;;  %196 = vst [vmem:[#allocation2 + $0x20] sm:$0xf] %v188_v10  ;;  %v189_v15 = vsel %vm2029_vm6, %v185_v9, 0.0  ;;  %v127_v26 = vsel %vm1947_vm4, %v117_v12, %v119_v11 }
  0xaa   :  { %v193_v22 = vcombine.high %v189_v15, %v189_v15  ;;  %198 = vst [vmem:[#allocation2 + $0x30] sm:$0xf] %v189_v15 }
  0xab   :  { %197 = vst [vmem:[#allocation2 + $0x28] sm:$0xf] %v192_v14 }
  0xac   :  { %199 = vst [vmem:[#allocation2 + $0x38] sm:$0xf] %v193_v22  ;;  %v123_v24 = vpop.permute.xlu1 %122  ;;  %v121_v25 = vpop.permute.xlu0 %120 }
  0xad   :  { %v128_v28 = vsel %vm1947_vm4, %v123_v24, %v117_v12  ;;  %v125_v29 = vsel %vm1947_vm4, %v121_v25, %v123_v24  ;;  %v126_v32 = vsel %vm1947_vm4, %v119_v11, %v121_v25  ;;  %vm2032_vm4 = vnez %v1978_v23 }
  0xae   :  { %v141_v33 = vcombine.low %v128_v28, %v127_v26  ;;  %v142_v34 = vcombine.low %v126_v32, %v125_v29 }
  0xb0   :  { %v145_v35 = vsel %vm2030_vm5, %v141_v33, 0.0  ;;  %v146_v45 = vsel %vm2031_vm7, %v142_v34, 0.0  ;;  %v203_v46 = vpop.permute.xlu1 %202  ;;  %v201_v47 = vpop.permute.xlu0 %200  ;;  %vm1950_vm7 = vcmp.lt.s32.totalorder %v1637_v50, 113 }
  0xb1   :  { %v149_v48 = vcombine.low %v145_v35, %v145_v35  ;;  %154 = vst [vmem:[#allocation2 + $0x8] sm:$0xf0] %v145_v35  ;;  %v150_v49 = vcombine.low %v146_v45, %v146_v45  ;;  %156 = vst [vmem:[#allocation2 + $0x18] sm:$0xf0] %v146_v45  ;;  %v211_v53 = vsel %vm1949_vm1, %v201_v47, %v203_v46 }
  0xb3   :  { %153 = vst [vmem:[#allocation2] sm:$0xf0] %v149_v48  ;;  %155 = vst [vmem:[#allocation2 + $0x10] sm:$0xf0] %v150_v49 }
  0xb4   :  { %v207_v51 = vpop.permute.xlu1 %206  ;;  %v205_v52 = vpop.permute.xlu0 %204 }
  0xb5   :  { %v212_v54 = vsel %vm1949_vm1, %v207_v51, %v201_v47  ;;  %v209_v55 = vsel %vm1949_vm1, %v205_v52, %v207_v51  ;;  %v210_v56 = vsel %vm1949_vm1, %v203_v46, %v205_v52  ;;  %vm2034_vm1 = vnez %v2001_v36 }
  0xb6   :  { %v227_v57 = vcombine.low %v212_v54, %v211_v53  ;;  %v228_v58 = vcombine.low %v210_v56, %v209_v55 }
  0xb8   :  { %v231_v59 = vsel %vm2032_vm4, %v227_v57, 0.0  ;;  %v232_v60 = vsel %vm2033_vm12, %v228_v58, 0.0  ;;  %v299_v61 = vpop.permute.xlu1 %298  ;;  %v297_v62 = vpop.permute.xlu0 %296  ;;  %v417_v15 = vld [vmem:[#allocation2 + $0x8] sm:$0xff]  ;;  %vm1951_vm12 = vcmp.lt.s32.totalorder %v1637_v50, 127  ;;  %v419_v29 = vld [vmem:[#allocation2 + $0x18] sm:$0xff] }
  0xb9   :  { %v235_v63 = vcombine.low %v231_v59, %v231_v59  ;;  %240 = vst [vmem:[#allocation2 + $0x28] sm:$0xf0] %v231_v59  ;;  %v236_v0 = vcombine.low %v232_v60, %v232_v60  ;;  %242 = vst [vmem:[#allocation2 + $0x38] sm:$0xf0] %v232_v60  ;;  %v307_v4 = vsel %vm1950_vm7, %v297_v62, %v299_v61 }
  0xba   :  { %v416_v32 = vld [vmem:[#allocation2] sm:$0xff]  ;;  %v418_v35 = vld [vmem:[#allocation2 + $0x10] sm:$0xff] }
  0xbb   :  { %239 = vst [vmem:[#allocation2 + $0x20] sm:$0xf0] %v235_v63  ;;  %241 = vst [vmem:[#allocation2 + $0x30] sm:$0xf0] %v236_v0 }
  0xbc   :  { %v303_v1 = vpop.permute.xlu1 %302  ;;  %v301_v2 = vpop.permute.xlu0 %300 }
  0xbd   :  { %v308_v5 = vsel %vm1950_vm7, %v303_v1, %v297_v62  ;;  %v305_v6 = vsel %vm1950_vm7, %v301_v2, %v303_v1  ;;  %v306_v7 = vsel %vm1950_vm7, %v299_v61, %v301_v2  ;;  %vm1953_vm7 = vcmp.lt.s32.totalorder %v1637_v50, 112 }
  0xbe   :  { %v325_v8 = vcombine.low %v307_v4, %v306_v7  ;;  %v326_v9 = vcombine.low %v305_v6, %v308_v5 }
  0xc0   :  { %v329_v10 = vsel %vm2034_vm1, %v325_v8, 0.0  ;;  %v330_v11 = vsel %vm1540_vm9, %v326_v9, 0.0  ;;  %v262_v12 = vpop.permute.xlu1 %261  ;;  %v260_v14 = vpop.permute.xlu0 %259  ;;  %v421_v22 = vld [vmem:[#allocation2 + $0x28] sm:$0xff]  ;;  %v423_v24 = vld [vmem:[#allocation2 + $0x38] sm:$0xff] }
  0xc1   :  { %v333_v25 = vcombine.high %v329_v10, %v329_v10  ;;  %v334_v26 = vcombine.high %v330_v11, %v330_v11  ;;  %337 = vst [vmem:[#allocation2 + $0x60] sm:$0xf] %v329_v10  ;;  %339 = vst [vmem:[#allocation2 + $0x70] sm:$0xf] %v330_v11  ;;  %v1107_v28 = vpack.c.bf16 %v421_v22, %v417_v15 }
  0xc2   :  { %v1115_v33 = vpack.c.bf16 %v423_v24, %v419_v29  ;;  %v420_v34 = vld [vmem:[#allocation2 + $0x20] sm:$0xff]  ;;  %v422_v45 = vld [vmem:[#allocation2 + $0x30] sm:$0xff]  ;;  %v270_v48 = vsel %vm1951_vm12, %v260_v14, %v262_v12 }
  0xc3   :  { %338 = vst [vmem:[#allocation2 + $0x68] sm:$0xf] %v333_v25  ;;  %340 = vst [vmem:[#allocation2 + $0x78] sm:$0xf] %v334_v26  ;;  %1108 = vmatprep.subr.bf16.mxu0 %v1107_v28  ;;  %v1109_v46 = vpack.c.bf16 %v420_v34, %v416_v32  ;;  %v1117_v47 = vpack.c.bf16 %v422_v45, %v418_v35 }
  0xc4   :  { %1116 = vmatprep.subr.bf16.mxu1 %v1115_v33  ;;  %v266_v49 = vpop.permute.xlu1 %265  ;;  %v264_v51 = vpop.permute.xlu0 %263 }
  0xc5   :  { %v271_v52 = vsel %vm1951_vm12, %v266_v49, %v260_v14  ;;  %v268_v53 = vsel %vm1951_vm12, %v264_v51, %v266_v49  ;;  %v269_v54 = vsel %vm1951_vm12, %v262_v12, %v264_v51  ;;  %1110 = vmatpush1.bf16.msra.mxu0 %v1109_v46  ;;  %1118 = vmatpush1.bf16.msra.mxu1 %v1117_v47  ;;  %vm1952_vm12 = vcmp.lt.s32.totalorder %v1637_v50, 111 }
  0xc6   :  { %v280_v55 = vcombine.low %v270_v48, %v269_v54  ;;  %v281_v56 = vcombine.low %v268_v53, %v271_v52 }
  0xc8   :  { %v284_v57 = vsel %vm1554_vm11, %v280_v55, 0.0  ;;  %v285_v58 = vsel %vm1564_vm0, %v281_v56, 0.0  ;;  %v344_v59 = vpop.permute.xlu1 %343  ;;  %v342_v60 = vpop.permute.xlu0 %341 }
  0xc9   :  { %v288_v61 = vcombine.low %v284_v57, %v284_v57  ;;  %v289_v62 = vcombine.low %v285_v58, %v285_v58  ;;  %293 = vst [vmem:[#allocation2 + $0x48] sm:$0xf0] %v284_v57  ;;  %295 = vst [vmem:[#allocation2 + $0x58] sm:$0xf0] %v285_v58  ;;  %v352_v1 = vsel %vm1953_vm7, %v342_v60, %v344_v59 }
  0xcb   :  { %292 = vst [vmem:[#allocation2 + $0x40] sm:$0xf0] %v288_v61  ;;  %294 = vst [vmem:[#allocation2 + $0x50] sm:$0xf0] %v289_v62 }
  0xcc   :  { %v348_v63 = vpop.permute.xlu1 %347  ;;  %v346_v0 = vpop.permute.xlu0 %345 }
  0xcd   :  { %v353_v2 = vsel %vm1953_vm7, %v348_v63, %v342_v60  ;;  %v350_v4 = vsel %vm1953_vm7, %v346_v0, %v348_v63  ;;  %v351_v5 = vsel %vm1953_vm7, %v344_v59, %v346_v0  ;;  %v415_v59 = vld [vmem:[%s1921_s3] sm:$0xf]  ;;  %vm1954_vm7 = vcmask 293888  }
  0xce   :  { %v362_v6 = vcombine.low %v352_v1, %v351_v5  ;;  %v363_v7 = vcombine.low %v350_v4, %v353_v2 }
  0xd0   :  { %v366_v8 = vsel %vm1582_vm2, %v362_v6, 0.0  ;;  %v367_v9 = vsel %vm1588_vm10, %v363_v7, 0.0  ;;  %v381_v10 = vpop.permute.xlu1 %380  ;;  %v379_v11 = vpop.permute.xlu0 %378  ;;  %v425_v33 = vld [vmem:[#allocation2 + $0x48] sm:$0xff]  ;;  %v427_v46 = vld [vmem:[#allocation2 + $0x58] sm:$0xff] }
  0xd1   :  { %v370_v12 = vcombine.low %v366_v8, %v366_v8  ;;  %v371_v14 = vcombine.low %v367_v9, %v367_v9  ;;  %375 = vst [vmem:[#allocation2 + $0x68] sm:$0xf0] %v366_v8  ;;  %377 = vst [vmem:[#allocation2 + $0x78] sm:$0xf0] %v367_v9  ;;  %v389_v24 = vsel %vm1952_vm12, %v379_v11, %v381_v10 }
  0xd2   :  { %v424_v53 = vld [vmem:[#allocation2 + $0x40] sm:$0xff]  ;;  %v426_v55 = vld [vmem:[#allocation2 + $0x50] sm:$0xff] }
  0xd3   :  { %374 = vst [vmem:[#allocation2 + $0x60] sm:$0xf0] %v370_v12  ;;  %376 = vst [vmem:[#allocation2 + $0x70] sm:$0xf0] %v371_v14 }
  0xd4   :  { %v385_v15 = vpop.permute.xlu1 %384  ;;  %v383_v22 = vpop.permute.xlu0 %382 }
  0xd5   :  { %v390_v25 = vsel %vm1952_vm12, %v385_v15, %v379_v11  ;;  %v387_v26 = vsel %vm1952_vm12, %v383_v22, %v385_v15  ;;  %v388_v28 = vsel %vm1952_vm12, %v381_v10, %v383_v22  ;;  %vm1955_vm12 = vcmask 1043456  }
  0xd6   :  { %v399_v29 = vcombine.low %v389_v24, %v388_v28  ;;  %v400_v32 = vcombine.low %v387_v26, %v390_v25 }
  0xd8   :  { %v403_v34 = vsel %vm1610_vm14, %v399_v29, 0.0  ;;  %v404_v35 = vsel %vm1616_vm8, %v400_v32, 0.0  ;;  %v429_v45 = vld [vmem:[#allocation2 + $0x68] sm:$0xff]  ;;  %v431_v47 = vld [vmem:[#allocation2 + $0x78] sm:$0xff] }
  0xd9   :  { %v407_v48 = vcombine.high %v403_v34, %v403_v34  ;;  %v408_v49 = vcombine.high %v404_v35, %v404_v35  ;;  %411 = vst [vmem:[#allocation2 + $0x80] sm:$0xf] %v403_v34  ;;  %413 = vst [vmem:[#allocation2 + $0x90] sm:$0xf] %v404_v35  ;;  %v1111_v51 = vpack.c.bf16 %v429_v45, %v425_v33 }
  0xda   :  { %v1119_v52 = vpack.c.bf16 %v431_v47, %v427_v46  ;;  %v428_v54 = vld [vmem:[#allocation2 + $0x60] sm:$0xff]  ;;  %v430_v56 = vld [vmem:[#allocation2 + $0x70] sm:$0xff] }
  0xdb   :  { %412 = vst [vmem:[#allocation2 + $0x88] sm:$0xf] %v407_v48  ;;  %414 = vst [vmem:[#allocation2 + $0x98] sm:$0xf] %v408_v49  ;;  %1112 = vmatprep.subr.bf16.mxu0 %v1111_v51  ;;  %v1113_v57 = vpack.c.bf16 %v428_v54, %v424_v53  ;;  %v1121_v58 = vpack.c.bf16 %v430_v56, %v426_v55 }
  0xdc   :  { %1120 = vmatprep.subr.bf16.mxu1 %v1119_v52 }
  0xdd   :  { %1114 = vmatpush1.bf16.msra.mxu0 %v1113_v57  ;;  %1122 = vmatpush1.bf16.msra.mxu1 %v1121_v58 }
  0xe0   :  { %v432_v62 = vld [vmem:[#allocation2 + $0x80] sm:$0xf]  ;;  %v434_v63 = vld [vmem:[#allocation2 + $0x90] sm:$0xf] }
  0xe2   :  { %v433_v60 = vld [vmem:[#allocation2 + $0x88] sm:$0xf]  ;;  %v435_v61 = vld [vmem:[#allocation2 + $0x98] sm:$0xf] }
  0xe3   :  { %1095 = vmatprep.subr.msk.mxu0 %vm1955_vm12, %v433_v60  ;;  %1098 = vmatprep.subr.msk.mxu1 %vm1955_vm12, %v435_v61 }
  0xe4   :  { %1096 = vmatpush1.msk.msra.mxu0 %vm1955_vm12, %v432_v62  ;;  %1099 = vmatpush1.msk.msra.mxu1 %vm1955_vm12, %v434_v63  ;;  %vm2036_vm12 = vnez %v1992_v31 }
  0xe5   :  { %1097 = vmatmul.mubr.msk.f32.vlgmr.msra.gmra.mrb[0].mxu0 %vm1954_vm7, %v415_v59  ;;  %1100 = vmatmul.mubr.msk.f32.vlgmr.msra.gmra.mrb[0].mxu1 %vm1954_vm7, %v415_v59  ;;  %v440_v0 = vpop.permute.xlu0 %439  ;;  %vm2035_vm7 = vnez %v1984_v27  ;;  %v902_v27 = vld [vmem:[%s1924_s6] sm:$0xf] }
  0xe6   :  { %987 = vmatprep.mubr.f32.mxu0 %v1239_v44  ;;  %1058 = vmatprep.mubr.f32.mxu1 %v1239_v44 }
 0x1b8   :  { %v525_v1 = vpop.f32.mrb[0].mxu0  ;;  %v596_v2 = vpop.f32.mrb[0].mxu1 }
 0x1b9   :  { %v526_v4 = vadd.f32 %v525_v1, %v440_v0  ;;  %v597_v5 = vadd.f32 %v596_v2, %v440_v0  ;;  %v527_v6 = vpop.f32.mrb[1].mxu0  ;;  %v598_v7 = vpop.f32.mrb[1].mxu1 }
 0x1ba   :  { %v528_v8 = vadd.f32 %v527_v6, %v440_v0  ;;  %v599_v9 = vadd.f32 %v598_v7, %v440_v0 }
 0x1bb   :  { %v601_v10 = vmax.f32 %v526_v4, 0.0  ;;  %v603_v11 = vmax.f32 %v597_v5, 0.0 }
 0x1bc   :  { %v602_v12 = vmax.f32 %v528_v8, 0.0  ;;  %v604_v14 = vmax.f32 %v599_v9, 0.0 }
 0x1bd   :  { %609 = vrot.lane.b32.xlu0 %v603_v11, %s1231_s29  ;;  %605 = vrot.lane.b32.xlu1 %v601_v10, %s1231_s29 }
 0x1be   :  { %v737_v15 = vcombine.low %v601_v10, %v602_v12  ;;  %v738_v22 = vcombine.low %v603_v11, %v604_v14 }
 0x1c0   :  { %v741_v44 = vsel %vm2035_vm7, %v737_v15, 0.0  ;;  %v742_v24 = vsel %vm2036_vm12, %v738_v22, 0.0  ;;  %vm2037_vm12 = vcmp.lt.s32.totalorder %v1637_v50, 17 }
 0x1c1   :  { %v745_v25 = vcombine.high %v741_v44, %v741_v44  ;;  %749 = vst [vmem:[#allocation2 + $0x40] sm:$0xf] %v741_v44  ;;  %v746_v26 = vcombine.high %v742_v24, %v742_v24  ;;  %751 = vst [vmem:[#allocation2 + $0x50] sm:$0xf] %v742_v24  ;;  %669 = vrot.lane.b32.xlu0 %v601_v10, %s1232_s1  ;;  %607 = vrot.lane.b32.xlu1 %v602_v12, %s1231_s29 }
 0x1c2   :  { %vm2038_vm7 = vmmov %vm2037_vm12 }
 0x1c3   :  { %750 = vst [vmem:[#allocation2 + $0x48] sm:$0xf] %v745_v25  ;;  %752 = vst [vmem:[#allocation2 + $0x58] sm:$0xf] %v746_v26 }
 0x1c4   :  { %vm2039_vm8 = vmmov %vm2038_vm7 }
 0x1c5   :  { %673 = vrot.lane.b32.xlu0 %v603_v11, %s1232_s1  ;;  %611 = vrot.lane.b32.xlu1 %v604_v14, %s1231_s29  ;;  %vm2040_vm14 = vmmov %vm2038_vm7 }
 0x1c9   :  { %637 = vrot.lane.b32.xlu0 %v601_v10, %s1233_s27  ;;  %671 = vrot.lane.b32.xlu1 %v602_v12, %s1232_s1 }
 0x1cd   :  { %641 = vrot.lane.b32.xlu0 %v603_v11, %s1233_s27  ;;  %675 = vrot.lane.b32.xlu1 %v604_v14, %s1232_s1 }
 0x1d1   :  { %701 = vrot.lane.b32.xlu0 %v601_v10, %s1234_s30  ;;  %639 = vrot.lane.b32.xlu1 %v602_v12, %s1233_s27 }
 0x1d5   :  { %705 = vrot.lane.b32.xlu0 %v603_v11, %s1234_s30  ;;  %643 = vrot.lane.b32.xlu1 %v604_v14, %s1233_s27 }
 0x1d9   :  { %785 = vrot.lane.b32.xlu0 %v601_v10, %s1235_s8  ;;  %703 = vrot.lane.b32.xlu1 %v602_v12, %s1234_s30 }
 0x1dd   :  { %789 = vrot.lane.b32.xlu0 %v603_v11, %s1235_s8  ;;  %707 = vrot.lane.b32.xlu1 %v604_v14, %s1234_s30 }
 0x1e1   :  { %753 = vrot.lane.b32.xlu0 %v601_v10, %s1236_s9  ;;  %787 = vrot.lane.b32.xlu1 %v602_v12, %s1235_s8 }
 0x1e5   :  { %757 = vrot.lane.b32.xlu0 %v603_v11, %s1236_s9  ;;  %791 = vrot.lane.b32.xlu1 %v604_v14, %s1235_s8 }
 0x1e9   :  { %817 = vrot.lane.b32.xlu0 %v601_v10, %s1237_s10  ;;  %755 = vrot.lane.b32.xlu1 %v602_v12, %s1236_s9 }
 0x1ed   :  { %821 = vrot.lane.b32.xlu0 %v603_v11, %s1237_s10  ;;  %759 = vrot.lane.b32.xlu1 %v604_v14, %s1236_s9 }
 0x1f1   :  { %849 = vrot.lane.b32.xlu0 %v601_v10, %s1238_s11  ;;  %819 = vrot.lane.b32.xlu1 %v602_v12, %s1237_s10 }
 0x1f5   :  { %853 = vrot.lane.b32.xlu0 %v603_v11, %s1238_s11  ;;  %823 = vrot.lane.b32.xlu1 %v604_v14, %s1237_s10 }
 0x1f9   :  { %905 = vperm.xlu0 %1152, %v902_v27   ;;  %851 = vrot.lane.b32.xlu1 %v602_v12, %s1238_s11 }
 0x1fd   :  { %855 = vrot.lane.b32.xlu1 %v604_v14, %s1238_s11 }
 0x22f   :  { %v610_v31 = vpop.permute.xlu0 %609  ;;  %v606_v28 = vpop.permute.xlu1 %605 }
 0x233   :  { %v670_v29 = vpop.permute.xlu0 %669  ;;  %v608_v32 = vpop.permute.xlu1 %607 }
 0x234   :  { %v614_v35 = vsel %vm2037_vm12, %v608_v32, %v610_v31  ;;  %v615_v45 = vsel %vm2038_vm7, %v606_v28, %v608_v32  ;;  %vm2045_vm12 = vcmp.lt.s32.totalorder %v1637_v50, 16 }
 0x235   :  { %vm2046_vm7 = vmmov %vm2045_vm12 }
 0x237   :  { %v674_v33 = vpop.permute.xlu0 %673  ;;  %v612_v34 = vpop.permute.xlu1 %611 }
 0x238   :  { %v613_v46 = vsel %vm2039_vm8, %v610_v31, %v612_v34  ;;  %v616_v47 = vsel %vm2040_vm14, %v612_v34, %v606_v28  ;;  %vm2041_vm14 = vcmp.lt.s32.totalorder %v1637_v50, 15 }
 0x239   :  { %v621_v48 = vcombine.low %v616_v47, %v615_v45  ;;  %v622_v49 = vcombine.low %v614_v35, %v613_v46  ;;  %vm2042_vm8 = vmmov %vm2041_vm14 }
 0x23b   :  { %v625_v51 = vsel %vm1374_vm13, %v621_v48, 0.0  ;;  %v626_v52 = vsel %vm1385_vm15, %v622_v49, 0.0  ;;  %v638_v53 = vpop.permute.xlu0 %637  ;;  %v672_v54 = vpop.permute.xlu1 %671  ;;  %vm2043_vm13 = vmmov %vm2042_vm8 }
 0x23c   :  { %v629_v55 = vcombine.high %v625_v51, %v625_v51  ;;  %v630_v56 = vcombine.high %v626_v52, %v626_v52  ;;  %633 = vst [vmem:[#allocation2] sm:$0xf] %v625_v51  ;;  %635 = vst [vmem:[#allocation2 + $0x10] sm:$0xf] %v626_v52  ;;  %v678_v59 = vsel %vm2041_vm14, %v672_v54, %v674_v33  ;;  %vm2049_vm14 = vnez %v1973_v21 }
 0x23d   :  { %v679_v16 = vsel %vm2042_vm8, %v670_v29, %v672_v54  ;;  %vm2044_vm15 = vmmov %vm2042_vm8  ;;  %vm2050_vm8 = vcmp.lt.s32.totalorder %v1637_v50, 1 }
 0x23e   :  { %634 = vst [vmem:[#allocation2 + $0x8] sm:$0xf] %v629_v55  ;;  %636 = vst [vmem:[#allocation2 + $0x18] sm:$0xf] %v630_v56 }
 0x23f   :  { %v642_v57 = vpop.permute.xlu0 %641  ;;  %v676_v58 = vpop.permute.xlu1 %675 }
 0x240   :  { %v677_v17 = vsel %vm2043_vm13, %v674_v33, %v676_v58  ;;  %v680_v60 = vsel %vm2044_vm15, %v676_v58, %v670_v29  ;;  %vm2051_vm13 = vmmov %vm2050_vm8 }
 0x241   :  { %v685_v61 = vcombine.low %v680_v60, %v679_v16  ;;  %v686_v62 = vcombine.low %v678_v59, %v677_v17 }
 0x243   :  { %v689_v63 = vsel %vm1397_vm3, %v685_v61, 0.0  ;;  %v690_v0 = vsel %vm2029_vm6, %v686_v62, 0.0  ;;  %v702_v1 = vpop.permute.xlu0 %701  ;;  %v640_v2 = vpop.permute.xlu1 %639  ;;  %vm2047_vm3 = vmmov %vm2046_vm7 }
 0x244   :  { %v693_v4 = vcombine.high %v689_v63, %v689_v63  ;;  %v694_v5 = vcombine.high %v690_v0, %v690_v0  ;;  %697 = vst [vmem:[#allocation2 + $0x20] sm:$0xf] %v689_v63  ;;  %699 = vst [vmem:[#allocation2 + $0x30] sm:$0xf] %v690_v0  ;;  %v646_v8 = vsel %vm2045_vm12, %v640_v2, %v642_v57  ;;  %vm2054_vm12 = vnez %v1988_v30 }
 0x245   :  { %v647_v18 = vsel %vm2046_vm7, %v638_v53, %v640_v2  ;;  %vm2048_vm6 = vmmov %vm2047_vm3  ;;  %vm2055_vm7 = vcmp.lt.s32.totalorder %v1637_v50, 113 }
 0x246   :  { %698 = vst [vmem:[#allocation2 + $0x28] sm:$0xf] %v693_v4  ;;  %700 = vst [vmem:[#allocation2 + $0x38] sm:$0xf] %v694_v5 }
 0x247   :  { %v706_v6 = vpop.permute.xlu0 %705  ;;  %v644_v7 = vpop.permute.xlu1 %643 }
 0x248   :  { %v645_v19 = vsel %vm2047_vm3, %v642_v57, %v644_v7  ;;  %v648_v9 = vsel %vm2048_vm6, %v644_v7, %v638_v53  ;;  %vm2056_vm3 = vmmov %vm2055_vm7 }
 0x249   :  { %v653_v10 = vcombine.low %v648_v9, %v647_v18  ;;  %v654_v11 = vcombine.low %v646_v8, %v645_v19  ;;  %vm2058_vm6 = vmmov %vm2056_vm3 }
 0x24b   :  { %v657_v12 = vsel %vm2030_vm5, %v653_v10, 0.0  ;;  %v658_v14 = vsel %vm2049_vm14, %v654_v11, 0.0  ;;  %v786_v15 = vpop.permute.xlu0 %785  ;;  %v704_v22 = vpop.permute.xlu1 %703  ;;  %vm2052_vm5 = vmmov %vm2050_vm8 }
 0x24c   :  { %v661_v44 = vcombine.low %v657_v12, %v657_v12  ;;  %v662_v24 = vcombine.low %v658_v14, %v658_v14  ;;  %666 = vst [vmem:[#allocation2 + $0x8] sm:$0xf0] %v657_v12  ;;  %668 = vst [vmem:[#allocation2 + $0x18] sm:$0xf0] %v658_v14  ;;  %v710_v27 = vsel %vm2050_vm8, %v704_v22, %v706_v6 }
 0x24d   :  { %v711_v20 = vsel %vm2051_vm13, %v702_v1, %v704_v22  ;;  %vm2053_vm15 = vmmov %vm2052_vm5 }
 0x24e   :  { %665 = vst [vmem:[#allocation2] sm:$0xf0] %v661_v44  ;;  %667 = vst [vmem:[#allocation2 + $0x10] sm:$0xf0] %v662_v24 }
 0x24f   :  { %v790_v25 = vpop.permute.xlu0 %789  ;;  %v708_v26 = vpop.permute.xlu1 %707 }
 0x250   :  { %v709_v21 = vsel %vm2052_vm5, %v706_v6, %v708_v26  ;;  %v712_v31 = vsel %vm2053_vm15, %v708_v26, %v702_v1 }
 0x251   :  { %v717_v28 = vcombine.low %v712_v31, %v711_v20  ;;  %v718_v29 = vcombine.low %v710_v27, %v709_v21 }
 0x253   :  { %v721_v32 = vsel %vm2032_vm4, %v717_v28, 0.0  ;;  %v722_v33 = vsel %vm2054_vm12, %v718_v29, 0.0  ;;  %v754_v34 = vpop.permute.xlu0 %753  ;;  %v788_v35 = vpop.permute.xlu1 %787  ;;  %vm2057_vm4 = vmmov %vm2056_vm3  ;;  %v883_v59 = vld [vmem:[#allocation2 + $0x8] sm:$0xff]  ;;  %v885_v63 = vld [vmem:[#allocation2 + $0x18] sm:$0xff]  ;;  %vm2069_vm12 = vnez %v2025_v42 }
 0x254   :  { %v725_v45 = vcombine.low %v721_v32, %v721_v32  ;;  %v726_v46 = vcombine.low %v722_v33, %v722_v33  ;;  %730 = vst [vmem:[#allocation2 + $0x28] sm:$0xf0] %v721_v32  ;;  %732 = vst [vmem:[#allocation2 + $0x38] sm:$0xf0] %v722_v33  ;;  %v794_v47 = vsel %vm2055_vm7, %v788_v35, %v790_v25 }
 0x255   :  { %v795_v48 = vsel %vm2056_vm3, %v786_v15, %v788_v35  ;;  %v882_v0 = vld [vmem:[#allocation2] sm:$0xff]  ;;  %v884_v4 = vld [vmem:[#allocation2 + $0x10] sm:$0xff]  ;;  %vm2072_vm3 = vnez %v2028_v43 }
 0x256   :  { %v801_v49 = vcombine.low %v795_v48, %v794_v47  ;;  %729 = vst [vmem:[#allocation2 + $0x20] sm:$0xf0] %v725_v45  ;;  %731 = vst [vmem:[#allocation2 + $0x30] sm:$0xf0] %v726_v46 }
 0x257   :  { %v758_v30 = vpop.permute.xlu0 %757  ;;  %v792_v51 = vpop.permute.xlu1 %791 }
 0x258   :  { %v805_v23 = vsel %vm2034_vm1, %v801_v49, 0.0  ;;  %v793_v53 = vsel %vm2057_vm4, %v790_v25, %v792_v51  ;;  %v796_v54 = vsel %vm2058_vm6, %v792_v51, %v786_v15  ;;  %vm2059_vm1 = vcmp.lt.s32.totalorder %v1637_v50, 127 }
 0x259   :  { %v809_v52 = vcombine.high %v805_v23, %v805_v23  ;;  %813 = vst [vmem:[#allocation2 + $0x60] sm:$0xf] %v805_v23  ;;  %v802_v55 = vcombine.low %v793_v53, %v796_v54  ;;  %vm2060_vm14 = vmmov %vm2059_vm1  ;;  %vm2073_vm4 = vcmask 1043456  }
 0x25a   :  { %vm2062_vm8 = vmmov %vm2059_vm1 }
 0x25b   :  { %814 = vst [vmem:[#allocation2 + $0x68] sm:$0xf] %v809_v52  ;;  %v806_v56 = vsel %vm1540_vm9, %v802_v55, 0.0  ;;  %v818_v57 = vpop.permute.xlu0 %817  ;;  %v756_v58 = vpop.permute.xlu1 %755  ;;  %v887_v36 = vld [vmem:[#allocation2 + $0x28] sm:$0xff]  ;;  %v889_v16 = vld [vmem:[#allocation2 + $0x38] sm:$0xff]  ;;  %vm2061_vm9 = vmmov %vm2059_vm1 }
 0x25c   :  { %v810_v17 = vcombine.high %v806_v56, %v806_v56  ;;  %815 = vst [vmem:[#allocation2 + $0x70] sm:$0xf] %v806_v56  ;;  %v762_v60 = vsel %vm2059_vm1, %v756_v58, %v758_v30  ;;  %v763_v61 = vsel %vm2060_vm14, %v754_v34, %v756_v58  ;;  %v1123_v62 = vpack.c.bf16 %v887_v36, %v883_v59  ;;  %vm2074_vm6 = vmmov %vm2073_vm4 }
 0x25d   :  { %v769_v1 = vcombine.low %v763_v61, %v762_v60  ;;  %v1131_v2 = vpack.c.bf16 %v889_v16, %v885_v63  ;;  %v886_v37 = vld [vmem:[#allocation2 + $0x20] sm:$0xff]  ;;  %v888_v5 = vld [vmem:[#allocation2 + $0x30] sm:$0xff]  ;;  %vm2075_vm1 = vcmask 293888   ;;  %vm2076_vm14 = vmmov %vm2073_vm4 }
 0x25e   :  { %816 = vst [vmem:[#allocation2 + $0x78] sm:$0xf] %v810_v17  ;;  %1124 = vmatprep.subr.bf16.mxu0 %v1123_v62  ;;  %v1125_v6 = vpack.c.bf16 %v886_v37, %v882_v0  ;;  %v1133_v7 = vpack.c.bf16 %v888_v5, %v884_v4  ;;  %v881_v17 = vld [vmem:[%s1923_s5] sm:$0xf] }
 0x25f   :  { %v773_v8 = vsel %vm1554_vm11, %v769_v1, 0.0  ;;  %1132 = vmatprep.subr.bf16.mxu1 %v1131_v2  ;;  %v822_v18 = vpop.permute.xlu0 %821  ;;  %v760_v19 = vpop.permute.xlu1 %759  ;;  %vm2063_vm11 = vcmp.lt.s32.totalorder %v1637_v50, 112  ;;  %v1155_v37 = vld [vmem:[%s1920_s2] sm:$0xff] }
 0x260   :  { %v777_v9 = vcombine.low %v773_v8, %v773_v8  ;;  %782 = vst [vmem:[#allocation2 + $0x48] sm:$0xf0] %v773_v8  ;;  %v761_v10 = vsel %vm2061_vm9, %v758_v30, %v760_v19  ;;  %v764_v11 = vsel %vm2062_vm8, %v760_v19, %v754_v34  ;;  %1126 = vmatpush1.bf16.msra.mxu0 %v1125_v6  ;;  %vm2064_vm13 = vmmov %vm2063_vm11 }
 0x261   :  { %1134 = vmatpush1.bf16.msra.mxu1 %v1133_v7  ;;  %v770_v12 = vcombine.low %v761_v10, %v764_v11  ;;  %vm2077_vm9 = vmmov %vm2073_vm4 }
 0x262   :  { %781 = vst [vmem:[#allocation2 + $0x40] sm:$0xf0] %v777_v9  ;;  %vm2078_vm8 = vmmov %vm2075_vm1  ;;  %v1156_v9 = vld [vmem:[%s1920_s2 + $0x8] sm:$0xff] }
 0x263   :  { %v774_v14 = vsel %vm1564_vm0, %v770_v12, 0.0  ;;  %v820_v38 = vpop.permute.xlu1 %819  ;;  %v850_v24 = vpop.permute.xlu0 %849  ;;  %vm2065_vm0 = vmmov %vm2063_vm11 }
 0x264   :  { %v778_v15 = vcombine.low %v774_v14, %v774_v14  ;;  %784 = vst [vmem:[#allocation2 + $0x58] sm:$0xf0] %v774_v14  ;;  %v826_v22 = vsel %vm2063_vm11, %v820_v38, %v822_v18  ;;  %v827_v44 = vsel %vm2064_vm13, %v818_v57, %v820_v38  ;;  %vm2066_vm5 = vmmov %vm2065_vm0 }
 0x265   :  { %v833_v25 = vcombine.low %v827_v44, %v826_v22 }
 0x266   :  { %783 = vst [vmem:[#allocation2 + $0x50] sm:$0xf0] %v778_v15 }
 0x267   :  { %v837_v26 = vsel %vm1582_vm2, %v833_v25, 0.0  ;;  %v824_v27 = vpop.permute.xlu1 %823  ;;  %v854_v28 = vpop.permute.xlu0 %853  ;;  %vm2067_vm2 = vcmp.lt.s32.totalorder %v1637_v50, 111  ;;  %v891_v47 = vld [vmem:[#allocation2 + $0x48] sm:$0xff] }
 0x268   :  { %v841_v20 = vcombine.low %v837_v26, %v837_v26  ;;  %846 = vst [vmem:[#allocation2 + $0x68] sm:$0xf0] %v837_v26  ;;  %v825_v39 = vsel %vm2065_vm0, %v822_v18, %v824_v27  ;;  %v828_v21 = vsel %vm2066_vm5, %v824_v27, %v818_v57  ;;  %vm2068_vm15 = vmmov %vm2067_vm2 }
 0x269   :  { %v834_v31 = vcombine.low %v825_v39, %v828_v21  ;;  %vm2071_vm7 = vmmov %vm2067_vm2  ;;  %v890_v52 = vld [vmem:[#allocation2 + $0x40] sm:$0xff] }
 0x26a   :  { %845 = vst [vmem:[#allocation2 + $0x60] sm:$0xf0] %v841_v20 }
 0x26b   :  { %v838_v29 = vsel %vm1588_vm10, %v834_v31, 0.0  ;;  %v852_v32 = vpop.permute.xlu1 %851  ;;  %vm2070_vm10 = vmmov %vm2067_vm2  ;;  %v893_v55 = vld [vmem:[#allocation2 + $0x58] sm:$0xff] }
 0x26c   :  { %v842_v33 = vcombine.low %v838_v29, %v838_v29  ;;  %848 = vst [vmem:[#allocation2 + $0x78] sm:$0xf0] %v838_v29  ;;  %v858_v40 = vsel %vm2067_vm2, %v852_v32, %v854_v28  ;;  %v859_v34 = vsel %vm2068_vm15, %v850_v24, %v852_v32 }
 0x26d   :  { %v865_v35 = vcombine.low %v859_v34, %v858_v40  ;;  %v892_v59 = vld [vmem:[#allocation2 + $0x50] sm:$0xff] }
 0x26e   :  { %847 = vst [vmem:[#allocation2 + $0x70] sm:$0xf0] %v842_v33 }
 0x26f   :  { %v869_v45 = vsel %vm2069_vm12, %v865_v35, 0.0  ;;  %v856_v46 = vpop.permute.xlu1 %855  ;;  %v895_v48 = vld [vmem:[#allocation2 + $0x68] sm:$0xff] }
 0x270   :  { %v873_v49 = vcombine.high %v869_v45, %v869_v45  ;;  %877 = vst [vmem:[#allocation2 + $0x80] sm:$0xf] %v869_v45  ;;  %v857_v41 = vsel %vm2070_vm10, %v854_v28, %v856_v46  ;;  %v860_v23 = vsel %vm2071_vm7, %v856_v46, %v850_v24  ;;  %v1127_v30 = vpack.c.bf16 %v895_v48, %v891_v47 }
 0x271   :  { %v866_v51 = vcombine.low %v857_v41, %v860_v23  ;;  %v894_v53 = vld [vmem:[#allocation2 + $0x60] sm:$0xff] }
 0x272   :  { %878 = vst [vmem:[#allocation2 + $0x88] sm:$0xf] %v873_v49  ;;  %1128 = vmatprep.subr.bf16.mxu0 %v1127_v30  ;;  %v1129_v54 = vpack.c.bf16 %v894_v53, %v890_v52 }
 0x273   :  { %v870_v42 = vsel %vm2072_vm3, %v866_v51, 0.0  ;;  %v897_v56 = vld [vmem:[#allocation2 + $0x78] sm:$0xff] }
 0x274   :  { %v874_v57 = vcombine.high %v870_v42, %v870_v42  ;;  %879 = vst [vmem:[#allocation2 + $0x90] sm:$0xf] %v870_v42  ;;  %1130 = vmatpush1.bf16.msra.mxu0 %v1129_v54  ;;  %v1135_v58 = vpack.c.bf16 %v897_v56, %v893_v55 }
 0x275   :  { %v896_v36 = vld [vmem:[#allocation2 + $0x70] sm:$0xff] }
 0x276   :  { %880 = vst [vmem:[#allocation2 + $0x98] sm:$0xf] %v874_v57  ;;  %1136 = vmatprep.subr.bf16.mxu1 %v1135_v58  ;;  %v1137_v50 = vpack.c.bf16 %v896_v36, %v892_v59 }
 0x277   :  { %v898_v43 = vld [vmem:[#allocation2 + $0x80] sm:$0xf] }
 0x278   :  { %1138 = vmatpush1.bf16.msra.mxu1 %v1137_v50  ;;  %v906_v62 = vpop.permute.xlu0 %905 }
 0x279   :  { %v899_v16 = vld [vmem:[#allocation2 + $0x88] sm:$0xf] }
 0x27a   :  { %1101 = vmatprep.subr.msk.mxu0 %vm2073_vm4, %v899_v16 }
 0x27b   :  { %1102 = vmatpush1.msk.msra.mxu0 %vm2074_vm6, %v898_v43  ;;  %v900_v61 = vld [vmem:[#allocation2 + $0x90] sm:$0xf] }
 0x27c   :  { %1103 = vmatmul.mubr.msk.f32.vlgmr.msra.gmra.mrb[2].mxu0 %vm2075_vm1, %v881_v17 }
 0x27d   :  { %v901_v60 = vld [vmem:[#allocation2 + $0x98] sm:$0xf] }
 0x27e   :  { %1104 = vmatprep.subr.msk.mxu1 %vm2076_vm14, %v901_v60 }
 0x27f   :  { %1105 = vmatpush1.msk.msra.mxu1 %vm2077_vm9, %v900_v61 }
 0x280   :  { %1106 = vmatmul.mubr.msk.f32.vlgmr.msra.gmra.mrb[2].mxu1 %vm2078_vm8, %v881_v17 }
 0x34f   :  { %v989_v63 = vpop.f32.mrb[2].mxu0 }
 0x350   :  { %v990_v0 = vadd.f32 %v989_v63, %v906_v62  ;;  %v991_v1 = vpop.f32.mrb[3].mxu0 }
 0x351   :  { %v992_v2 = vadd.f32 %v991_v1, %v906_v62 }
 0x352   :  { %v1065_v4 = vadd.f32 %v1155_v37, %v990_v0 }
 0x353   :  { %v1066_v5 = vadd.f32 %v992_v2, %v1352_v13  ;;  %v1060_v6 = vpop.f32.mrb[2].mxu1 }
 0x354   :  { %v1061_v7 = vadd.f32 %v1060_v6, %v906_v62  ;;  %v1062_v8 = vpop.f32.mrb[3].mxu1 }
 0x355   :  { %v1073_v18 = vcombine.low %v1065_v4, %v1066_v5  ;;  %v1063_v19 = vadd.f32 %v1062_v8, %v906_v62 }
 0x356   :  { %v1067_v10 = vadd.f32 %v1156_v9, %v1061_v7 }
 0x357   :  { %1077 = vst [vmem:[#allocation8] sm:$0xff] %v1073_v18  ;;  %v1068_v11 = vadd.f32 %v1063_v19, %v1324_v3 }
 0x359   :  { %v1074_v12 = vcombine.low %v1067_v10, %v1068_v11 }
 0x35b   :  { %1078 = vst [vmem:[#allocation8 + $0x8] sm:$0xff] %v1074_v12 }
 0x35c   :  { %1212 = shalt.err (!%p1209_p6)
}
 0x35d   :  { %s1213_s2 = scalar_lea.hbm %s1925_s7, 256 }
 0x35e   :  { %p1214_p7 = scmp.ne.s32.totalorder %s1925_s7, %s1213_s2  ;;  %p1217_p8 = scmp.lt.u32.totalorder %s1213_s2, %s1925_s7 }
 0x360   :  { %p1219_p9 = pnand %p1217_p8, %p1214_p7 }
 0x362   :  { %1222 = shalt.err (!%p1219_p9)
}
 0x363   :  { %1088 = dma.vmem_to_hbm [thread:$0]  %s1086_s21, 256, %s1925_s7, [#allocation5]  }
 0x364   :  { %1227 = dma.done.wait [#allocation5], 256  }
 0x365   :  { %1228 = vsyncadd [#allocation5], 4294967040 }
 0x366   :  { %1092 = vsyncpa [#allocation4], 1 }
 0x367   :  { %1093 = vsyncpa [#allocation7], 1 }
 0x368   :  { %1094 = vsyncpa [#allocation5], 1 }

</bundles_post_ra>
